<compile_context>
chip_gen: v7x
topology: tpu7x:2x2x1
jax: 0.10.0
libtpu: 0.0.40
codegen_flags: <defaults>
</compile_context>

<pallas_src>
import functools

import jax
import jax.numpy as jnp
from jax.experimental import pallas as pl
from jax.experimental.pallas import tpu as pltpu


# ---------------------------------------------------------------------------
# Kernel
# ---------------------------------------------------------------------------
def mlp_kernel(x_ref, w1_ref, b1_ref, w2_ref, b2_ref,
               w3_ref, b3_ref, w4_ref, b4_ref, o_ref):
    """x:(tm,n_in)  w1:(n_in,H)  w2/w3:(H,H)  w4:(H,Op)  b1..b3:(1,H) fp32
    b4:(1,n_out) fp32  o:(tm,n_out).  H = hidden padded to 128."""
    cdt = w1_ref.dtype  # MXU input dtype (fp32 or bf16); accumulation is fp32.

    x = x_ref[...].astype(cdt)
    # Layer 1: Linear + tanh (narrow-K matmul, K = real n_in)
    h = jnp.tanh(
        jnp.dot(x, w1_ref[...], preferred_element_type=jnp.float32)
        + b1_ref[...])
    # Layer 2: Linear + tanh
    h = jnp.tanh(
        jnp.dot(h.astype(cdt), w2_ref[...], preferred_element_type=jnp.float32)
        + b2_ref[...])
    # Layer 3: Linear + tanh
    h = jnp.tanh(
        jnp.dot(h.astype(cdt), w3_ref[...], preferred_element_type=jnp.float32)
        + b3_ref[...])
    # Layer 4: Linear (no activation).  Full 128-wide MXU tile, then slice to
    # the real output width before the (narrow) store.
    out = jnp.dot(h.astype(cdt), w4_ref[...],
                  preferred_element_type=jnp.float32)
    n_out = o_ref.shape[-1]
    o_ref[...] = (out[:, :n_out] + b4_ref[...]).astype(o_ref.dtype)


# ---------------------------------------------------------------------------
# Helpers
# ---------------------------------------------------------------------------
def _round_up(x, m):
    return ((x + m - 1) // m) * m


def _pad2d(a, rows, cols):
    return jnp.pad(a, ((0, rows - a.shape[0]), (0, cols - a.shape[1])))


def prepare_params(params, compute_dtype=jnp.float32):
    """One-time parameter prep: pad hidden/output weight dims to 128 lanes and
    cast weights to the MXU compute dtype.  Zero padding is exact (zero weight
    rows/cols + zero biases keep padded lanes identically zero through tanh).
    Call once; reuse the returned dict for every forward call."""
    w1, w2, w3, w4 = params["w1"], params["w2"], params["w3"], params["w4"]
    b1, b2, b3, b4 = params["b1"], params["b2"], params["b3"], params["b4"]
    n_in, n_hid = w1.shape
    n_out = w4.shape[1]
    n_hid_p = _round_up(n_hid, 128)
    n_out_p = _round_up(n_out, 128)
    cdt = compute_dtype
    return {
        # Weights: K of layer 1 stays at the real n_in (narrow-K matmul).
        "w1": _pad2d(w1, n_in, n_hid_p).astype(cdt),
        "w2": _pad2d(w2, n_hid_p, n_hid_p).astype(cdt),
        "w3": _pad2d(w3, n_hid_p, n_hid_p).astype(cdt),
        "w4": _pad2d(w4, n_hid_p, n_out_p).astype(cdt),
        # Biases stay fp32 (added post-accumulation on the VPU).
        "b1": _pad2d(b1, 1, n_hid_p).astype(jnp.float32),
        "b2": _pad2d(b2, 1, n_hid_p).astype(jnp.float32),
        "b3": _pad2d(b3, 1, n_hid_p).astype(jnp.float32),
        "b4": b4.astype(jnp.float32),            # (1, n_out), unpadded
    }


# ---------------------------------------------------------------------------
# Forward (jitted; params come pre-padded from prepare_params)
# ---------------------------------------------------------------------------
@functools.partial(jax.jit, static_argnames=("tile_m",))
def nn_forward(x, prepped, tile_m=None):
    """MLP forward pass with a single fused Pallas kernel.

    x: [B, n_in] float32.  prepped: output of prepare_params()."""
    w1, b1 = prepped["w1"], prepped["b1"]
    w2, b2 = prepped["w2"], prepped["b2"]
    w3, b3 = prepped["w3"], prepped["b3"]
    w4, b4 = prepped["w4"], prepped["b4"]

    B, n_in = x.shape
    n_hid_p = w1.shape[1]
    n_out_p = w4.shape[1]
    n_out = b4.shape[1]
    cdt = w1.dtype
    out_dtype = x.dtype

    # ---- batch tile choice -------------------------------------------------
    # Small batches: a single grid step (grid is a serial loop on v5e/v6e; the
    # ~0.35us/step overhead dominates at this problem size).  Large batches:
    # big tiles (<=1024 rows) and >=2 steps so v7x megacore can shard them.
    b8 = _round_up(B, 8)
    if tile_m is None:
        if b8 <= 512:
            tile_m = b8
        else:
            tile_m = min(1024, _round_up(pl.cdiv(b8, 2), 8))
    assert tile_m % 8 == 0, "tile_m must be a multiple of 8 (sublane count)"

    B_p = _round_up(B, tile_m)
    grid = (B_p // tile_m,)

    # ---- batch padding only; feature dims stay at their real widths --------
    x_p = x if B_p == B else jnp.pad(x, ((0, B_p - B), (0, 0)))
    if x_p.dtype != cdt:
        x_p = x_p.astype(cdt)        # bf16 path: halve the per-step x DMA

    # ---- BlockSpecs: activations tile the batch; params are grid-invariant -
    x_spec = pl.BlockSpec((tile_m, n_in), lambda i: (i, 0))
    o_spec = pl.BlockSpec((tile_m, n_out), lambda i: (i, 0))

    def full_spec(shape):
        return pl.BlockSpec(shape, lambda i: (0, 0))

    # ---- cost estimate ------------------------------------------------------
    flops = 2 * B_p * (n_in * n_hid_p + 2 * n_hid_p * n_hid_p
                       + n_hid_p * n_out_p)
    transcendentals = 3 * B_p * n_hid_p
    bpe_c = jnp.dtype(cdt).itemsize
    w_bytes = bpe_c * (n_in * n_hid_p + 2 * n_hid_p * n_hid_p
                       + n_hid_p * n_out_p)
    b_bytes = 4 * (3 * n_hid_p + n_out)
    io_bytes = B_p * (n_in * bpe_c + n_out * 4)
    cost = pl.CostEstimate(flops=flops, transcendentals=transcendentals,
                           bytes_accessed=io_bytes + w_bytes + b_bytes)

    # ---- tight VMEM budget (single-digit MiB; leave headroom on v7x) -------
    need = (2 * tile_m * (n_in * bpe_c + n_out * 4)   # double-buffered x/out
            + 2 * (w_bytes + b_bytes)                 # double-buffered params
            + 6 * tile_m * n_hid_p * 4)               # fp32 intermediates
    vmem_limit = int(min(max(2 * need, 4 << 20), 32 << 20))

    out_p = pl.pallas_call(
        mlp_kernel,
        out_shape=jax.ShapeDtypeStruct((B_p, n_out), out_dtype),
        grid_spec=pltpu.PrefetchScalarGridSpec(
            num_scalar_prefetch=0,
            grid=grid,
            in_specs=[
                x_spec,
                full_spec(w1.shape), full_spec(b1.shape),
                full_spec(w2.shape), full_spec(b2.shape),
                full_spec(w3.shape), full_spec(b3.shape),
                full_spec(w4.shape), full_spec(b4.shape),
            ],
            out_specs=o_spec,
        ),
        compiler_params=pltpu.CompilerParams(
            dimension_semantics=("parallel",),
            vmem_limit_bytes=vmem_limit),
        cost_estimate=cost,
    )(x_p, w1, b1, w2, b2, w3, b3, w4, b4)

    return out_p if B_p == B else out_p[:B]


# ---------------------------------------------------------------------------
# Params / reference
# ---------------------------------------------------------------------------
def init_params(key, n_input, n_hidden, n_output):
    """Init matching the PyTorch module's scheme: weights ~ N(0, 0.1),
    biases = 0. Weights stored as [in, out] (transpose of nn.Linear)."""
    ks = jax.random.split(key, 4)
    dims = [(n_input, n_hidden), (n_hidden, n_hidden),
            (n_hidden, n_hidden), (n_hidden, n_output)]
    params = {}
    for idx, ((d_in, d_out), k) in enumerate(zip(dims, ks), start=1):
        params[f"w{idx}"] = 0.1 * jax.random.normal(k, (d_in, d_out),
                                                    dtype=jnp.float32)
        params[f"b{idx}"] = jnp.zeros((1, d_out), dtype=jnp.float32)
    return params


def nn_forward_ref(x, params):
    """Pure-JAX reference for correctness checking."""
    h = jnp.tanh(x @ params["w1"] + params["b1"])
    h = jnp.tanh(h @ params["w2"] + params["b2"])
    h = jnp.tanh(h @ params["w3"] + params["b3"])
    return h @ params["w4"] + params["b4"]


if __name__ == "__main__":
    n_input, n_hidden, n_output = 4, 32, 2
    batch = 200  # deliberately NOT a multiple of 8*?: exercises batch padding

    key = jax.random.PRNGKey(0)
    k_x, k_p = jax.random.split(key)
    x = jax.random.normal(k_x, (batch, n_input), dtype=jnp.float32)
    params = init_params(k_p, n_input, n_hidden, n_output)

    ref = nn_forward_ref(x, params)

    # fp32 MXU path (exact match to the reference).
    prepped_f32 = prepare_params(params, compute_dtype=jnp.float32)
    out_f32 = jax.block_until_ready(nn_forward(x, prepped_f32))
    assert out_f32.shape == (batch, n_output)
    assert jnp.allclose(out_f32, ref, atol=1e-5, rtol=1e-5)

    # Second call reuses the compiled executable and prepared params (hot path).
    out_f32b = jax.block_until_ready(nn_forward(x, prepped_f32))
    assert jnp.allclose(out_f32b, ref, atol=1e-5, rtol=1e-5)

    # bf16 MXU inputs with fp32 accumulation (v6e/v7x fast path).
    prepped_bf16 = prepare_params(params, compute_dtype=jnp.bfloat16)
    out_bf16 = jax.block_until_ready(nn_forward(x, prepped_bf16))
    assert out_bf16.shape == (batch, n_output)
    assert jnp.allclose(out_bf16, ref, atol=3e-2, rtol=3e-2)

    print("KERNEL_OK")
</pallas_src>

<mosaic_0001>
module attributes {stable_mosaic.version = 11 : i64} {
  func.func @mlp_kernel(%arg0: i32, %arg1: memref<200x4xf32, #tpu.memory_space<vmem>>, %arg2: memref<4x128xf32, #tpu.memory_space<vmem>>, %arg3: memref<1x128xf32, #tpu.memory_space<vmem>>, %arg4: memref<128x128xf32, #tpu.memory_space<vmem>>, %arg5: memref<1x128xf32, #tpu.memory_space<vmem>>, %arg6: memref<128x128xf32, #tpu.memory_space<vmem>>, %arg7: memref<1x128xf32, #tpu.memory_space<vmem>>, %arg8: memref<128x128xf32, #tpu.memory_space<vmem>>, %arg9: memref<1x2xf32, #tpu.memory_space<vmem>>, %arg10: memref<200x2xf32, #tpu.memory_space<vmem>>) attributes {dimension_semantics = [#tpu.dimension_semantics<parallel>], iteration_bounds = array<i64: 1>, scalar_prefetch = 0 : i64, scratch_operands = 0 : i64, tpu.core_type = #tpu.core_type<tc>, window_params = [{transform_indices = @transform_0, window_bounds = array<i64: 200, 4>}, {pipeline_mode = #tpu.pipeline_mode<synchronous>, transform_indices = @transform_1, window_bounds = array<i64: 4, 128>}, {pipeline_mode = #tpu.pipeline_mode<synchronous>, transform_indices = @transform_2, window_bounds = array<i64: 1, 128>}, {pipeline_mode = #tpu.pipeline_mode<synchronous>, transform_indices = @transform_3, window_bounds = array<i64: 128, 128>}, {pipeline_mode = #tpu.pipeline_mode<synchronous>, transform_indices = @transform_4, window_bounds = array<i64: 1, 128>}, {pipeline_mode = #tpu.pipeline_mode<synchronous>, transform_indices = @transform_5, window_bounds = array<i64: 128, 128>}, {pipeline_mode = #tpu.pipeline_mode<synchronous>, transform_indices = @transform_6, window_bounds = array<i64: 1, 128>}, {pipeline_mode = #tpu.pipeline_mode<synchronous>, transform_indices = @transform_7, window_bounds = array<i64: 128, 128>}, {pipeline_mode = #tpu.pipeline_mode<synchronous>, transform_indices = @transform_8, window_bounds = array<i64: 1, 2>}, {transform_indices = @transform_9, window_bounds = array<i64: 200, 2>}]} {
    %c0 = arith.constant 0 : index
    %c0_0 = arith.constant 0 : index
    %0 = vector.load %arg1[%c0, %c0_0] : memref<200x4xf32, #tpu.memory_space<vmem>>, vector<200x4xf32>
    %c0_1 = arith.constant 0 : index
    %c0_2 = arith.constant 0 : index
    %1 = vector.load %arg2[%c0_1, %c0_2] : memref<4x128xf32, #tpu.memory_space<vmem>>, vector<4x128xf32>
    %cst = arith.constant dense<0.000000e+00> : vector<200x128xf32>
    %2 = tpu.matmul %0, %1, %cst {dimension_numbers = #tpu.dot_dimension_numbers<[1], [0], [0], [1], [0, 0, 1, 1], [], []>} : vector<200x4xf32>, vector<4x128xf32>, vector<200x128xf32> -> vector<200x128xf32>
    %c0_3 = arith.constant 0 : index
    %c0_4 = arith.constant 0 : index
    %3 = vector.load %arg3[%c0_3, %c0_4] : memref<1x128xf32, #tpu.memory_space<vmem>>, vector<1x128xf32>
    %4 = vector.broadcast %3 : vector<1x128xf32> to vector<200x128xf32>
    %5 = arith.addf %2, %4 : vector<200x128xf32>
    %6 = math.tanh %5 : vector<200x128xf32>
    %c0_5 = arith.constant 0 : index
    %c0_6 = arith.constant 0 : index
    %7 = vector.load %arg4[%c0_5, %c0_6] : memref<128x128xf32, #tpu.memory_space<vmem>>, vector<128x128xf32>
    %cst_7 = arith.constant dense<0.000000e+00> : vector<200x128xf32>
    %8 = tpu.matmul %6, %7, %cst_7 {dimension_numbers = #tpu.dot_dimension_numbers<[1], [0], [0], [1], [0, 0, 1, 1], [], []>} : vector<200x128xf32>, vector<128x128xf32>, vector<200x128xf32> -> vector<200x128xf32>
    %c0_8 = arith.constant 0 : index
    %c0_9 = arith.constant 0 : index
    %9 = vector.load %arg5[%c0_8, %c0_9] : memref<1x128xf32, #tpu.memory_space<vmem>>, vector<1x128xf32>
    %10 = vector.broadcast %9 : vector<1x128xf32> to vector<200x128xf32>
    %11 = arith.addf %8, %10 : vector<200x128xf32>
    %12 = math.tanh %11 : vector<200x128xf32>
    %c0_10 = arith.constant 0 : index
    %c0_11 = arith.constant 0 : index
    %13 = vector.load %arg6[%c0_10, %c0_11] : memref<128x128xf32, #tpu.memory_space<vmem>>, vector<128x128xf32>
    %cst_12 = arith.constant dense<0.000000e+00> : vector<200x128xf32>
    %14 = tpu.matmul %12, %13, %cst_12 {dimension_numbers = #tpu.dot_dimension_numbers<[1], [0], [0], [1], [0, 0, 1, 1], [], []>} : vector<200x128xf32>, vector<128x128xf32>, vector<200x128xf32> -> vector<200x128xf32>
    %c0_13 = arith.constant 0 : index
    %c0_14 = arith.constant 0 : index
    %15 = vector.load %arg7[%c0_13, %c0_14] : memref<1x128xf32, #tpu.memory_space<vmem>>, vector<1x128xf32>
    %16 = vector.broadcast %15 : vector<1x128xf32> to vector<200x128xf32>
    %17 = arith.addf %14, %16 : vector<200x128xf32>
    %18 = math.tanh %17 : vector<200x128xf32>
    %c0_15 = arith.constant 0 : index
    %c0_16 = arith.constant 0 : index
    %19 = vector.load %arg8[%c0_15, %c0_16] : memref<128x128xf32, #tpu.memory_space<vmem>>, vector<128x128xf32>
    %cst_17 = arith.constant dense<0.000000e+00> : vector<200x128xf32>
    %20 = tpu.matmul %18, %19, %cst_17 {dimension_numbers = #tpu.dot_dimension_numbers<[1], [0], [0], [1], [0, 0, 1, 1], [], []>} : vector<200x128xf32>, vector<128x128xf32>, vector<200x128xf32> -> vector<200x128xf32>
    %21 = vector.extract_strided_slice %20 {offsets = [0, 0], sizes = [200, 2], strides = [1, 1]} : vector<200x128xf32> to vector<200x2xf32>
    %c0_18 = arith.constant 0 : index
    %c0_19 = arith.constant 0 : index
    %22 = vector.load %arg9[%c0_18, %c0_19] : memref<1x2xf32, #tpu.memory_space<vmem>>, vector<1x2xf32>
    %23 = vector.broadcast %22 : vector<1x2xf32> to vector<200x2xf32>
    %24 = arith.addf %21, %23 : vector<200x2xf32>
    %c0_20 = arith.constant 0 : index
    %c0_21 = arith.constant 0 : index
    %25 = vector.load %arg10[%c0_20, %c0_21] : memref<200x2xf32, #tpu.memory_space<vmem>>, vector<200x2xf32>
    tpu.vector_store %arg10[%c0_20, %c0_21], %24 {strides = array<i32>} : memref<200x2xf32, #tpu.memory_space<vmem>>, vector<200x2xf32>,
    return
  }
  func.func @transform_0(%arg0: i32) -> (i32, i32) {
    %c0_i32 = arith.constant 0 : i32
    %c0_i32_0 = arith.constant 0 : i32
    return %arg0, %c0_i32 : i32, i32
  }
  func.func @transform_1(%arg0: i32) -> (i32, i32) {
    %c0_i32 = arith.constant 0 : i32
    %c0_i32_0 = arith.constant 0 : i32
    %c0_i32_1 = arith.constant 0 : i32
    return %c0_i32, %c0_i32_0 : i32, i32
  }
  func.func @transform_2(%arg0: i32) -> (i32, i32) {
    %c0_i32 = arith.constant 0 : i32
    %c0_i32_0 = arith.constant 0 : i32
    %c0_i32_1 = arith.constant 0 : i32
    return %c0_i32, %c0_i32_0 : i32, i32
  }
  func.func @transform_3(%arg0: i32) -> (i32, i32) {
    %c0_i32 = arith.constant 0 : i32
    %c0_i32_0 = arith.constant 0 : i32
    %c0_i32_1 = arith.constant 0 : i32
    return %c0_i32, %c0_i32_0 : i32, i32
  }
  func.func @transform_4(%arg0: i32) -> (i32, i32) {
    %c0_i32 = arith.constant 0 : i32
    %c0_i32_0 = arith.constant 0 : i32
    %c0_i32_1 = arith.constant 0 : i32
    return %c0_i32, %c0_i32_0 : i32, i32
  }
  func.func @transform_5(%arg0: i32) -> (i32, i32) {
    %c0_i32 = arith.constant 0 : i32
    %c0_i32_0 = arith.constant 0 : i32
    %c0_i32_1 = arith.constant 0 : i32
    return %c0_i32, %c0_i32_0 : i32, i32
  }
  func.func @transform_6(%arg0: i32) -> (i32, i32) {
    %c0_i32 = arith.constant 0 : i32
    %c0_i32_0 = arith.constant 0 : i32
    %c0_i32_1 = arith.constant 0 : i32
    return %c0_i32, %c0_i32_0 : i32, i32
  }
  func.func @transform_7(%arg0: i32) -> (i32, i32) {
    %c0_i32 = arith.constant 0 : i32
    %c0_i32_0 = arith.constant 0 : i32
    %c0_i32_1 = arith.constant 0 : i32
    return %c0_i32, %c0_i32_0 : i32, i32
  }
  func.func @transform_8(%arg0: i32) -> (i32, i32) {
    %c0_i32 = arith.constant 0 : i32
    %c0_i32_0 = arith.constant 0 : i32
    %c0_i32_1 = arith.constant 0 : i32
    return %c0_i32, %c0_i32_0 : i32, i32
  }
  func.func @transform_9(%arg0: i32) -> (i32, i32) {
    %c0_i32 = arith.constant 0 : i32
    %c0_i32_0 = arith.constant 0 : i32
    return %arg0, %c0_i32 : i32, i32
  }
}

</mosaic_0001>

<bundles_post_ra>
// kernel: nn_forward.1
= control target key start
LH: loop header
LB: loop body
LE: loop exit
PB: predicated region body
PF: predicated region fallthrough
CT: control target
= control target key end

     0   :  { %14 = vsyncpa [#allocation3], 0  ;;  %s2697_s0 = inlined_call_operand.vmem [shape: f32[200,4], index: 0, kind: input, shape index: {}]   ;;  %s2698_s1 = inlined_call_operand.vmem [shape: f32[4,128], index: 1, kind: input, shape index: {}]   ;;  %s2699_s2 = inlined_call_operand.vmem [shape: f32[1,128], index: 2, kind: input, shape index: {}]   ;;  %s2700_s3 = inlined_call_operand.vmem [shape: f32[128,128], index: 3, kind: input, shape index: {}]   ;;  %s2701_s4 = inlined_call_operand.vmem [shape: f32[1,128], index: 4, kind: input, shape index: {}]   ;;  %s2702_s5 = inlined_call_operand.hbm [shape: f32[128,128], index: 5, kind: input, shape index: {}]   ;;  %s2703_s6 = inlined_call_operand.vmem [shape: f32[1,128], index: 6, kind: input, shape index: {}]   ;;  %s2704_s7 = inlined_call_operand.hbm [shape: f32[128,128], index: 7, kind: input, shape index: {}]   ;;  %s2705_s8 = inlined_call_operand.vmem [shape: f32[1,2], index: 8, kind: input, shape index: {}]   ;;  %s2706_s9 = inlined_call_operand.vmem [shape: f32[200,2], index: 9, kind: output, shape index: {}]  }
   0x1   :  { %15 = vsyncpa [#allocation5], 0  ;;  %s2004_s30 = smov [#allocation2]   ;;  %s1956_s13 = scalar_lea.hbm %s2702_s5, 2048 }
   0x2   :  { %s31_s10 = sshll.u32 %s2004_s30, 4  ;;  %p1957_p0 = scmp.ne.s32.totalorder %s2702_s5, %s1956_s13  ;;  %s32_s10 = int_to_ptr.vmem [resolvable:$true] %s31_s10 }
   0x3   :  { %p1960_p1 = scmp.lt.u32.totalorder %s1956_s13, %s2702_s5 }
   0x5   :  { %p1962_p2 = pnand %p1960_p1, %p1957_p0 }
   0x7   :  { %1965 = shalt.err (!%p1962_p2)
}
   0x8   :  { %s1966_s18 = scalar_lea.vmem %s32_s10, 2048  ;;  %p1971_p4 = scmp.lt.s32.totalorder %s32_s10, %s32_s10 }
   0x9   :  { %p1967_p3 = scmp.ne.s32.totalorder %s32_s10, %s1966_s18  ;;  %p1972_p5 = scmp.lt.s32.totalorder %s1966_s18, %s1966_s18 }
   0xb   :  { %p1973_p6 = por %p1972_p5, %p1971_p4 }
   0xd   :  { %p1974_p7 = pnand %p1973_p6, %p1967_p3 }
   0xf   :  { %1977 = shalt.err (!%p1974_p7)
}
  0x10   :  { %s2005_s19 = smov 128   ;;  %s2006_s20 = smov 8  }
  0x11   :  { %37 = dma.hbm_to_vmem [thread:$0]  %s2702_s5, 2048, %s32_s10, [#allocation3], %s2005_s19, %s2005_s19, %s2006_s20  }
  0x12   :  { %s2007_s23 = smov [#allocation4]   ;;  %s1978_s27 = scalar_lea.hbm %s2704_s7, 2048 }
  0x13   :  { %s45_s24 = sshll.u32 %s2007_s23, 4  ;;  %p1979_p8 = scmp.ne.s32.totalorder %s2704_s7, %s1978_s27  ;;  %s46_s24 = int_to_ptr.vmem [resolvable:$true] %s45_s24 }
  0x14   :  { %p1982_p9 = scmp.lt.u32.totalorder %s1978_s27, %s2704_s7 }
  0x16   :  { %p1984_p10 = pnand %p1982_p9, %p1979_p8 }
  0x18   :  { %1987 = shalt.err (!%p1984_p10)
}
  0x19   :  { %s1988_s12 = scalar_lea.vmem %s46_s24, 2048  ;;  %p1993_p12 = scmp.lt.s32.totalorder %s46_s24, %s46_s24 }
  0x1a   :  { %p1989_p11 = scmp.ne.s32.totalorder %s46_s24, %s1988_s12  ;;  %p1994_p13 = scmp.lt.s32.totalorder %s1988_s12, %s1988_s12 }
  0x1c   :  { %p1995_p0 = por %p1994_p13, %p1993_p12 }
  0x1e   :  { %p1996_p1 = pnand %p1995_p0, %p1989_p11 }
  0x20   :  { %1999 = shalt.err (!%p1996_p1)
}
  0x21   :  { %51 = dma.hbm_to_vmem [thread:$0]  %s2704_s7, 2048, %s46_s24, [#allocation5], %s2005_s19, %s2005_s19, %s2006_s20  }
  0x22   :  { %2000 = dma.done.wait [#allocation3], 2048  }
  0x23   :  { %2001 = vsyncadd [#allocation3], 4294965248 }
  0x24   :  { %2002 = dma.done.wait [#allocation5], 2048  }
  0x25   :  { %2003 = vsyncadd [#allocation5], 4294965248  ;;  %v2008_v0 = vmov 0.0   ;;  %vm2009_vm0 = vmmov 0   ;;  %v2010_v1 = vmov 0.0|0.0   ;;  %vm169_vm1 = vcmask 1043456  }
  0x26   :  { %1313 = vmatprep.subr.mxu0 %v2008_v0  ;;  %1315 = vmatprep.mubr.msk.f32.mxu0 %vm2009_vm0, %v2008_v0  ;;  %vm93_vm2 = vcmask 31744   ;;  %v85_v2 = vld [vmem:[%s2698_s1] sm:$0xf]  ;;  %v61_v4 = vld [vmem:[%s2697_s0 + $0x8] sm:$0xff]  ;;  %v62_v5 = vld [vmem:[%s2697_s0 + $0x10] sm:$0xff]  ;;  %vm1102_vm3 = vcmask 15360  }
  0x27   :  { %1711 = vmatprep.subr.bf16.mxu1 %v2010_v1  ;;  %1422 = vmatprep.mubr.msk.f32.mxu1 %vm2009_vm0, %v2008_v0  ;;  %v60_v3 = vld [vmem:[%s2697_s0] sm:$0xff]  ;;  %v389_v7 = vld [vmem:[%s2700_s3 + $0x8] sm:$0xff]  ;;  %v390_v8 = vld [vmem:[%s2700_s3 + $0x10] sm:$0xff] }
  0x28   :  { %1314 = vmatpush3.msk.msra.mxu0 %vm169_vm1, %v85_v2  ;;  %v388_v6 = vld [vmem:[%s2700_s3] sm:$0xff]  ;;  %v391_v9 = vld [vmem:[%s2700_s3 + $0x18] sm:$0xff]  ;;  %v393_v14 = vld [vmem:[%s2700_s3 + $0x28] sm:$0xff] }
  0x29   :  { %1316 = vmatmul.mubr.msk.f32.vlgmr.msra.gmra.mrb[0].mxu0 %vm93_vm2, %v60_v3  ;;  %1735 = vmatprep.subr.bf16.mxu0 %v2010_v1  ;;  %v1712_v10 = vpack.c.bf16 %v389_v7, %v388_v6  ;;  %v63_v11 = vld [vmem:[%s2697_s0 + $0x18] sm:$0xff]  ;;  %v1715_v12 = vpack.c.bf16 %v391_v9, %v390_v8  ;;  %v392_v13 = vld [vmem:[%s2700_s3 + $0x20] sm:$0xff]  ;;  %v394_v17 = vld [vmem:[%s2700_s3 + $0x30] sm:$0xff] }
  0x2a   :  { %1318 = vmatprep.mubr.msk.f32.mxu0 %vm2009_vm0, %v2008_v0  ;;  %v64_v15 = vld [vmem:[%s2697_s0 + $0x20] sm:$0xff]  ;;  %v1718_v16 = vpack.c.bf16 %v393_v14, %v392_v13  ;;  %v395_v18 = vld [vmem:[%s2700_s3 + $0x38] sm:$0xff]  ;;  %v65_v19 = vld [vmem:[%s2697_s0 + $0x28] sm:$0xff] }
  0x2b   :  { %1713 = vmatpush3.bf16.msra.mxu1 %v1712_v10  ;;  %v1721_v20 = vpack.c.bf16 %v395_v18, %v394_v17  ;;  %v396_v21 = vld [vmem:[%s2700_s3 + $0x40] sm:$0xff]  ;;  %v397_v22 = vld [vmem:[%s2700_s3 + $0x48] sm:$0xff]  ;;  %v66_v23 = vld [vmem:[%s2697_s0 + $0x30] sm:$0xff] }
  0x2c   :  { %1714 = vmatprep.subr.bf16.mxu1 %v2010_v1  ;;  %v1724_v24 = vpack.c.bf16 %v397_v22, %v396_v21  ;;  %v67_v25 = vld [vmem:[%s2697_s0 + $0x38] sm:$0xff]  ;;  %v68_v26 = vld [vmem:[%s2697_s0 + $0x40] sm:$0xff]  ;;  %v69_v27 = vld [vmem:[%s2697_s0 + $0x48] sm:$0xff] }
  0x2d   :  { %1319 = vmatmul.mubr.msk.f32.gmra.mrb[2].mxu0 %vm93_vm2, %v61_v4  ;;  %v70_v28 = vld [vmem:[%s2697_s0 + $0x50] sm:$0xff]  ;;  %v71_v29 = vld [vmem:[%s2697_s0 + $0x58] sm:$0xff]  ;;  %v72_v30 = vld [vmem:[%s2697_s0 + $0x60] sm:$0xff] }
  0x2e   :  { %1321 = vmatprep.mubr.msk.f32.mxu0 %vm2009_vm0, %v2008_v0  ;;  %v73_v31 = vld [vmem:[%s2697_s0 + $0x68] sm:$0xff]  ;;  %v74_v32 = vld [vmem:[%s2697_s0 + $0x70] sm:$0xff]  ;;  %v75_v33 = vld [vmem:[%s2697_s0 + $0x78] sm:$0xff] }
  0x2f   :  { %1716 = vmatpush3.bf16.msra.mxu1 %v1715_v12  ;;  %v76_v34 = vld [vmem:[%s2697_s0 + $0x80] sm:$0xff]  ;;  %v77_v35 = vld [vmem:[%s2697_s0 + $0x88] sm:$0xff]  ;;  %v78_v36 = vld [vmem:[%s2697_s0 + $0x90] sm:$0xff] }
  0x30   :  { %1717 = vmatprep.subr.bf16.mxu1 %v2010_v1  ;;  %v79_v37 = vld [vmem:[%s2697_s0 + $0x98] sm:$0xff]  ;;  %v80_v38 = vld [vmem:[%s2697_s0 + $0xa0] sm:$0xff]  ;;  %v81_v39 = vld [vmem:[%s2697_s0 + $0xa8] sm:$0xff] }
  0x31   :  { %1322 = vmatmul.mubr.msk.f32.gmra.mrb[4].mxu0 %vm93_vm2, %v62_v5  ;;  %v398_v40 = vld [vmem:[%s2700_s3 + $0x50] sm:$0xff]  ;;  %v399_v41 = vld [vmem:[%s2700_s3 + $0x58] sm:$0xff]  ;;  %v400_v44 = vld [vmem:[%s2700_s3 + $0x60] sm:$0xff] }
  0x32   :  { %1324 = vmatprep.mubr.msk.f32.mxu0 %vm2009_vm0, %v2008_v0  ;;  %v1727_v42 = vpack.c.bf16 %v399_v41, %v398_v40  ;;  %v82_v43 = vld [vmem:[%s2697_s0 + $0xb0] sm:$0xff]  ;;  %v401_v45 = vld [vmem:[%s2700_s3 + $0x68] sm:$0xff]  ;;  %v83_v47 = vld [vmem:[%s2697_s0 + $0xb8] sm:$0xff] }
  0x33   :  { %1719 = vmatpush3.bf16.msra.mxu1 %v1718_v16  ;;  %v1730_v46 = vpack.c.bf16 %v401_v45, %v400_v44  ;;  %v402_v48 = vld [vmem:[%s2700_s3 + $0x70] sm:$0xff]  ;;  %v403_v49 = vld [vmem:[%s2700_s3 + $0x78] sm:$0xff]  ;;  %v84_v51 = vld [vmem:[%s2697_s0 + $0xc0] sm:$0xff] }
  0x34   :  { %1720 = vmatprep.subr.bf16.mxu1 %v2010_v1  ;;  %v1733_v50 = vpack.c.bf16 %v403_v49, %v402_v48  ;;  %v626_v52 = vld [vmem:[#allocation2] sm:$0xff]  ;;  %v627_v53 = vld [vmem:[#allocation2 + $0x8] sm:$0xff]  ;;  %v628_v54 = vld [vmem:[#allocation2 + $0x10] sm:$0xff] }
  0x35   :  { %1325 = vmatmul.mubr.msk.f32.gmra.mrb[6].mxu0 %vm93_vm2, %v63_v11  ;;  %v1736_v55 = vpack.c.bf16 %v627_v53, %v626_v52  ;;  %v629_v56 = vld [vmem:[#allocation2 + $0x18] sm:$0xff]  ;;  %v630_v58 = vld [vmem:[#allocation2 + $0x20] sm:$0xff]  ;;  %v631_v59 = vld [vmem:[#allocation2 + $0x28] sm:$0xff] }
  0x36   :  { %1327 = vmatprep.mubr.msk.f32.mxu0 %vm2009_vm0, %v2008_v0  ;;  %v1739_v57 = vpack.c.bf16 %v629_v56, %v628_v54  ;;  %v1742_v60 = vpack.c.bf16 %v631_v59, %v630_v58  ;;  %v632_v61 = vld [vmem:[#allocation2 + $0x30] sm:$0xff]  ;;  %v633_v62 = vld [vmem:[#allocation2 + $0x38] sm:$0xff]  ;;  %v634_v2 = vld [vmem:[#allocation2 + $0x40] sm:$0xff] }
  0x37   :  { %1722 = vmatpush3.bf16.msra.mxu1 %v1721_v20  ;;  %1737 = vmatpush3.bf16.msra.mxu0 %v1736_v55  ;;  %v1745_v63 = vpack.c.bf16 %v633_v62, %v632_v61  ;;  %v635_v3 = vld [vmem:[#allocation2 + $0x48] sm:$0xff]  ;;  %v2307_v5 = vld [vmem:[%s2699_s2] ss:$0 sm:$0xff]  ;;  %v636_v6 = vld [vmem:[#allocation2 + $0x50] sm:$0xff] }
  0x38   :  { %1723 = vmatprep.subr.bf16.mxu1 %v2010_v1  ;;  %1738 = vmatprep.subr.bf16.mxu0 %v2010_v1  ;;  %v1748_v4 = vpack.c.bf16 %v635_v3, %v634_v2  ;;  %v637_v7 = vld [vmem:[#allocation2 + $0x58] sm:$0xff]  ;;  %v638_v12 = vld [vmem:[#allocation2 + $0x60] sm:$0xff]  ;;  %v639_v13 = vld [vmem:[#allocation2 + $0x68] sm:$0xff] }
  0x39   :  { %1328 = vmatmul.mubr.msk.f32.gmra.mrb[8].mxu0 %vm93_vm2, %v64_v15  ;;  %v1751_v11 = vpack.c.bf16 %v637_v7, %v636_v6  ;;  %v1754_v17 = vpack.c.bf16 %v639_v13, %v638_v12 }
  0x3a   :  { %1330 = vmatprep.mubr.msk.f32.mxu0 %vm2009_vm0, %v2008_v0 }
  0x3b   :  { %1725 = vmatpush3.bf16.msra.mxu1 %v1724_v24  ;;  %1740 = vmatpush3.bf16.msra.mxu0 %v1739_v57 }
  0x3c   :  { %1726 = vmatprep.subr.bf16.mxu1 %v2010_v1  ;;  %1741 = vmatprep.subr.bf16.mxu0 %v2010_v1 }
  0x3d   :  { %1331 = vmatmul.mubr.msk.f32.gmra.mrb[10].mxu0 %vm93_vm2, %v65_v19 }
  0x3e   :  { %1333 = vmatprep.mubr.msk.f32.mxu0 %vm2009_vm0, %v2008_v0 }
  0x3f   :  { %1728 = vmatpush3.bf16.msra.mxu1 %v1727_v42  ;;  %1743 = vmatpush3.bf16.msra.mxu0 %v1742_v60 }
  0x40   :  { %1729 = vmatprep.subr.bf16.mxu1 %v2010_v1  ;;  %1744 = vmatprep.subr.bf16.mxu0 %v2010_v1 }
  0x41   :  { %1334 = vmatmul.mubr.msk.f32.gmra.mrb[12].mxu0 %vm93_vm2, %v66_v23 }
  0x42   :  { %1336 = vmatprep.mubr.msk.f32.mxu0 %vm2009_vm0, %v2008_v0 }
  0x43   :  { %1731 = vmatpush3.bf16.msra.mxu1 %v1730_v46  ;;  %1746 = vmatpush3.bf16.msra.mxu0 %v1745_v63 }
  0x44   :  { %1732 = vmatprep.subr.bf16.mxu1 %v2010_v1  ;;  %1747 = vmatprep.subr.bf16.mxu0 %v2010_v1 }
  0x45   :  { %1337 = vmatmul.mubr.msk.f32.gmra.mrb[14].mxu0 %vm93_vm2, %v67_v25 }
  0x46   :  { %1339 = vmatprep.mubr.msk.f32.mxu0 %vm2009_vm0, %v2008_v0 }
  0x47   :  { %1734 = vmatpush3.bf16.msra.mxu1 %v1733_v50  ;;  %1749 = vmatpush3.bf16.msra.mxu0 %v1748_v4 }
  0x48   :  { %1783 = vmatprep.subr.bf16.mxu1 %v2010_v1  ;;  %1750 = vmatprep.subr.bf16.mxu0 %v2010_v1 }
  0x49   :  { %1340 = vmatmul.mubr.msk.f32.gmra.mrb[16].mxu0 %vm93_vm2, %v68_v26 }
  0x4a   :  { %1342 = vmatprep.mubr.msk.f32.mxu0 %vm2009_vm0, %v2008_v0 }
  0x4b   :  { %1752 = vmatpush3.bf16.msra.mxu0 %v1751_v11 }
  0x4c   :  { %1753 = vmatprep.subr.bf16.mxu0 %v2010_v1 }
  0x4d   :  { %1343 = vmatmul.mubr.msk.f32.gmra.mrb[18].mxu0 %vm93_vm2, %v69_v27 }
  0x4e   :  { %1345 = vmatprep.mubr.msk.f32.mxu0 %vm2009_vm0, %v2008_v0 }
  0x4f   :  { %1755 = vmatpush3.bf16.msra.mxu0 %v1754_v17 }
  0x50   :  { %1756 = vmatprep.subr.bf16.mxu0 %v2010_v1 }
  0x51   :  { %1346 = vmatmul.mubr.msk.f32.gmra.mrb[20].mxu0 %vm93_vm2, %v70_v28 }
  0x52   :  { %1348 = vmatprep.mubr.msk.f32.mxu0 %vm2009_vm0, %v2008_v0 }
  0x55   :  { %1349 = vmatmul.mubr.msk.f32.gmra.mrb[22].mxu0 %vm93_vm2, %v71_v29 }
  0x56   :  { %1351 = vmatprep.mubr.msk.f32.mxu0 %vm2009_vm0, %v2008_v0 }
  0x59   :  { %1352 = vmatmul.mubr.msk.f32.gmra.mrb[24].mxu0 %vm93_vm2, %v72_v30 }
  0x5a   :  { %1354 = vmatprep.mubr.msk.f32.mxu0 %vm2009_vm0, %v2008_v0 }
  0x5d   :  { %1355 = vmatmul.mubr.msk.f32.gmra.mrb[26].mxu0 %vm93_vm2, %v73_v31 }
  0x5e   :  { %1357 = vmatprep.mubr.msk.f32.mxu0 %vm2009_vm0, %v2008_v0 }
  0x61   :  { %1358 = vmatmul.mubr.msk.f32.gmra.mrb[28].mxu0 %vm93_vm2, %v74_v32 }
  0x62   :  { %1360 = vmatprep.mubr.msk.f32.mxu0 %vm2009_vm0, %v2008_v0 }
  0x65   :  { %1361 = vmatmul.mubr.msk.f32.gmra.mrb[30].mxu0 %vm93_vm2, %v75_v33 }
  0x66   :  { %1363 = vmatprep.mubr.msk.f32.mxu0 %vm2009_vm0, %v2008_v0 }
  0x69   :  { %1364 = vmatmul.mubr.msk.f32.gmra.mrb[32].mxu0 %vm93_vm2, %v76_v34 }
  0x6a   :  { %1366 = vmatprep.mubr.msk.f32.mxu0 %vm2009_vm0, %v2008_v0 }
  0x6d   :  { %1367 = vmatmul.mubr.msk.f32.gmra.mrb[34].mxu0 %vm93_vm2, %v77_v35 }
  0x6e   :  { %1369 = vmatprep.mubr.msk.f32.mxu0 %vm2009_vm0, %v2008_v0 }
  0x71   :  { %1370 = vmatmul.mubr.msk.f32.gmra.mrb[36].mxu0 %vm93_vm2, %v78_v36 }
  0x72   :  { %1372 = vmatprep.mubr.msk.f32.mxu0 %vm2009_vm0, %v2008_v0 }
  0x75   :  { %1373 = vmatmul.mubr.msk.f32.gmra.mrb[38].mxu0 %vm93_vm2, %v79_v37 }
  0x76   :  { %1375 = vmatprep.mubr.msk.f32.mxu0 %vm2009_vm0, %v2008_v0 }
  0x79   :  { %1376 = vmatmul.mubr.msk.f32.gmra.mrb[40].mxu0 %vm93_vm2, %v80_v38 }
  0x7a   :  { %1378 = vmatprep.mubr.msk.f32.mxu0 %vm2009_vm0, %v2008_v0 }
  0x7d   :  { %1379 = vmatmul.mubr.msk.f32.gmra.mrb[42].mxu0 %vm93_vm2, %v81_v39 }
  0x7e   :  { %1381 = vmatprep.mubr.msk.f32.mxu0 %vm2009_vm0, %v2008_v0 }
  0x81   :  { %1382 = vmatmul.mubr.msk.f32.gmra.mrb[44].mxu0 %vm93_vm2, %v82_v43 }
  0x82   :  { %1384 = vmatprep.mubr.msk.f32.mxu0 %vm2009_vm0, %v2008_v0 }
  0x85   :  { %1385 = vmatmul.mubr.msk.f32.gmra.mrb[46].mxu0 %vm93_vm2, %v83_v47 }
  0x86   :  { %1387 = vmatprep.mubr.msk.f32.mxu0 %vm2009_vm0, %v2008_v0 }
  0x89   :  { %1388 = vmatmul.mubr.msk.f32.gmra.mrb[48].mxu0 %vm93_vm2, %v84_v51 }
  0x8a   :  { %1529 = vmatprep.mubr.msk.f32.mxu0 %vm2009_vm0, %v2008_v0 }
  0xfc   :  { %v239_v8 = vpop.f32.mrb[0].mxu0 }
  0xfd   :  { %v240_v9 = vadd.f32 %v2307_v5, %v239_v8  ;;  %v1317_v10 = vpop.f32.mrb[1].mxu0 }
  0xff   :  { %1806 = vtanh.f32 %v240_v9 }
 0x100   :  { %v244_v14 = vpop.f32.mrb[2].mxu0 }
 0x101   :  { %v245_v15 = vadd.f32 %v2307_v5, %v244_v14  ;;  %v1320_v16 = vpop.f32.mrb[3].mxu0 }
 0x103   :  { %1808 = vtanh.f32 %v245_v15 }
 0x104   :  { %v249_v18 = vpop.f32.mrb[4].mxu0 }
 0x105   :  { %v250_v19 = vadd.f32 %v2307_v5, %v249_v18  ;;  %v1323_v20 = vpop.f32.mrb[5].mxu0 }
 0x107   :  { %1810 = vtanh.f32 %v250_v19 }
 0x108   :  { %v254_v21 = vpop.f32.mrb[6].mxu0 }
 0x109   :  { %v1807_v22 = vpop.eup %1806  ;;  %v255_v23 = vadd.f32 %v2307_v5, %v254_v21  ;;  %v1326_v24 = vpop.f32.mrb[7].mxu0 }
 0x10a   :  { %1423 = vmatmul.mubr.f32.vlgmr.msra.gmra.mrb[0].mxu1 %v1807_v22 }
 0x10b   :  { %1812 = vtanh.f32 %v255_v23  ;;  %1425 = vmatprep.mubr.msk.f32.mxu1 %vm2009_vm0, %v2008_v0 }
 0x10c   :  { %v259_v25 = vpop.f32.mrb[8].mxu0 }
 0x10d   :  { %v1809_v26 = vpop.eup %1808  ;;  %v260_v27 = vadd.f32 %v2307_v5, %v259_v25  ;;  %v1329_v28 = vpop.f32.mrb[9].mxu0 }
 0x10e   :  { %1426 = vmatmul.mubr.f32.gmra.mrb[2].mxu1 %v1809_v26 }
 0x10f   :  { %1814 = vtanh.f32 %v260_v27  ;;  %1428 = vmatprep.mubr.msk.f32.mxu1 %vm2009_vm0, %v2008_v0 }
 0x110   :  { %v264_v29 = vpop.f32.mrb[10].mxu0 }
 0x111   :  { %v1811_v30 = vpop.eup %1810  ;;  %v265_v31 = vadd.f32 %v2307_v5, %v264_v29  ;;  %v1332_v32 = vpop.f32.mrb[11].mxu0 }
 0x112   :  { %1429 = vmatmul.mubr.f32.gmra.mrb[4].mxu1 %v1811_v30 }
 0x113   :  { %1816 = vtanh.f32 %v265_v31  ;;  %1431 = vmatprep.mubr.msk.f32.mxu1 %vm2009_vm0, %v2008_v0 }
 0x114   :  { %v269_v33 = vpop.f32.mrb[12].mxu0 }
 0x115   :  { %v1813_v34 = vpop.eup %1812  ;;  %v270_v35 = vadd.f32 %v2307_v5, %v269_v33  ;;  %v1335_v36 = vpop.f32.mrb[13].mxu0 }
 0x116   :  { %1432 = vmatmul.mubr.f32.gmra.mrb[6].mxu1 %v1813_v34 }
 0x117   :  { %1818 = vtanh.f32 %v270_v35  ;;  %1434 = vmatprep.mubr.msk.f32.mxu1 %vm2009_vm0, %v2008_v0 }
 0x118   :  { %v274_v37 = vpop.f32.mrb[14].mxu0 }
 0x119   :  { %v1815_v38 = vpop.eup %1814  ;;  %v275_v39 = vadd.f32 %v2307_v5, %v274_v37  ;;  %v1338_v40 = vpop.f32.mrb[15].mxu0 }
 0x11a   :  { %1435 = vmatmul.mubr.f32.gmra.mrb[8].mxu1 %v1815_v38 }
 0x11b   :  { %1820 = vtanh.f32 %v275_v39  ;;  %1437 = vmatprep.mubr.msk.f32.mxu1 %vm2009_vm0, %v2008_v0 }
 0x11c   :  { %v279_v41 = vpop.f32.mrb[16].mxu0 }
 0x11d   :  { %v1817_v42 = vpop.eup %1816  ;;  %v280_v43 = vadd.f32 %v2307_v5, %v279_v41  ;;  %v1341_v44 = vpop.f32.mrb[17].mxu0 }
 0x11e   :  { %1438 = vmatmul.mubr.f32.gmra.mrb[10].mxu1 %v1817_v42 }
 0x11f   :  { %1822 = vtanh.f32 %v280_v43  ;;  %1440 = vmatprep.mubr.msk.f32.mxu1 %vm2009_vm0, %v2008_v0 }
 0x120   :  { %v284_v45 = vpop.f32.mrb[18].mxu0 }
 0x121   :  { %v1819_v46 = vpop.eup %1818  ;;  %v285_v47 = vadd.f32 %v2307_v5, %v284_v45  ;;  %v1344_v48 = vpop.f32.mrb[19].mxu0 }
 0x122   :  { %1441 = vmatmul.mubr.f32.gmra.mrb[12].mxu1 %v1819_v46  ;;  %v640_v48 = vld [vmem:[#allocation2 + $0x70] sm:$0xff] }
 0x123   :  { %1824 = vtanh.f32 %v285_v47  ;;  %1443 = vmatprep.mubr.msk.f32.mxu1 %vm2009_vm0, %v2008_v0 }
 0x124   :  { %v289_v49 = vpop.f32.mrb[20].mxu0 }
 0x125   :  { %v1821_v50 = vpop.eup %1820  ;;  %v290_v51 = vadd.f32 %v2307_v5, %v289_v49  ;;  %v1347_v52 = vpop.f32.mrb[21].mxu0  ;;  %v641_v49 = vld [vmem:[#allocation2 + $0x78] sm:$0xff] }
 0x126   :  { %1444 = vmatmul.mubr.f32.gmra.mrb[14].mxu1 %v1821_v50 }
 0x127   :  { %1826 = vtanh.f32 %v290_v51  ;;  %1446 = vmatprep.mubr.msk.f32.mxu1 %vm2009_vm0, %v2008_v0  ;;  %v1757_v51 = vpack.c.bf16 %v641_v49, %v640_v48 }
 0x128   :  { %v294_v53 = vpop.f32.mrb[22].mxu0 }
 0x129   :  { %v1823_v54 = vpop.eup %1822  ;;  %v295_v55 = vadd.f32 %v2307_v5, %v294_v53  ;;  %v1350_v56 = vpop.f32.mrb[23].mxu0  ;;  %1758 = vmatpush3.bf16.msra.mxu0 %v1757_v51  ;;  %v864_v53 = vld [vmem:[#allocation4] sm:$0xff] }
 0x12a   :  { %1447 = vmatmul.mubr.f32.gmra.mrb[16].mxu1 %v1823_v54  ;;  %1759 = vmatprep.subr.bf16.mxu0 %v2010_v1  ;;  %v865_v54 = vld [vmem:[#allocation4 + $0x8] sm:$0xff]  ;;  %v866_v56 = vld [vmem:[#allocation4 + $0x10] sm:$0xff] }
 0x12b   :  { %1828 = vtanh.f32 %v295_v55  ;;  %1449 = vmatprep.mubr.msk.f32.mxu1 %vm2009_vm0, %v2008_v0  ;;  %v1760_v55 = vpack.c.bf16 %v865_v54, %v864_v53 }
 0x12c   :  { %v299_v57 = vpop.f32.mrb[24].mxu0 }
 0x12d   :  { %v1825_v58 = vpop.eup %1824  ;;  %v300_v59 = vadd.f32 %v2307_v5, %v299_v57  ;;  %v1353_v60 = vpop.f32.mrb[25].mxu0  ;;  %v867_v57 = vld [vmem:[#allocation4 + $0x18] sm:$0xff]  ;;  %1791 = vmatpush3.bf16.msra.mxu1 %v1760_v55 }
 0x12e   :  { %1450 = vmatmul.mubr.f32.gmra.mrb[18].mxu1 %v1825_v58  ;;  %1784 = vmatprep.subr.bf16.mxu1 %v2010_v1  ;;  %v1763_v58 = vpack.c.bf16 %v867_v57, %v866_v56  ;;  %v869_v60 = vld [vmem:[#allocation4 + $0x28] sm:$0xff] }
 0x12f   :  { %1830 = vtanh.f32 %v300_v59  ;;  %1452 = vmatprep.mubr.msk.f32.mxu1 %vm2009_vm0, %v2008_v0  ;;  %v868_v59 = vld [vmem:[#allocation4 + $0x20] sm:$0xff] }
 0x130   :  { %v304_v61 = vpop.f32.mrb[26].mxu0 }
 0x131   :  { %v1827_v62 = vpop.eup %1826  ;;  %v305_v63 = vadd.f32 %v2307_v5, %v304_v61  ;;  %v1356_v2 = vpop.f32.mrb[27].mxu0  ;;  %1792 = vmatpush3.bf16.msra.mxu1 %v1763_v58  ;;  %v1766_v61 = vpack.c.bf16 %v869_v60, %v868_v59 }
 0x132   :  { %1453 = vmatmul.mubr.f32.gmra.mrb[20].mxu1 %v1827_v62  ;;  %1785 = vmatprep.subr.bf16.mxu1 %v2010_v1  ;;  %v870_v62 = vld [vmem:[#allocation4 + $0x30] sm:$0xff] }
 0x133   :  { %1832 = vtanh.f32 %v305_v63  ;;  %1455 = vmatprep.mubr.msk.f32.mxu1 %vm2009_vm0, %v2008_v0  ;;  %v871_v63 = vld [vmem:[#allocation4 + $0x38] sm:$0xff] }
 0x134   :  { %v309_v3 = vpop.f32.mrb[28].mxu0  ;;  %v1769_v2 = vpack.c.bf16 %v871_v63, %v870_v62 }
 0x135   :  { %v1829_v4 = vpop.eup %1828  ;;  %v310_v6 = vadd.f32 %v2307_v5, %v309_v3  ;;  %v1359_v7 = vpop.f32.mrb[29].mxu0  ;;  %1793 = vmatpush3.bf16.msra.mxu1 %v1766_v61  ;;  %v872_v3 = vld [vmem:[#allocation4 + $0x40] sm:$0xff] }
 0x136   :  { %1456 = vmatmul.mubr.f32.gmra.mrb[22].mxu1 %v1829_v4  ;;  %1786 = vmatprep.subr.bf16.mxu1 %v2010_v1  ;;  %v873_v4 = vld [vmem:[#allocation4 + $0x48] sm:$0xff] }
 0x137   :  { %1834 = vtanh.f32 %v310_v6  ;;  %1458 = vmatprep.mubr.msk.f32.mxu1 %vm2009_vm0, %v2008_v0  ;;  %v2395_v6 = vld [vmem:[%s2701_s4] ss:$0 sm:$0xff]  ;;  %v2398_v7 = vpack.c.bf16 %v873_v4, %v872_v3 }
 0x138   :  { %v314_v8 = vpop.f32.mrb[30].mxu0 }
 0x139   :  { %v1831_v9 = vpop.eup %1830  ;;  %v315_v10 = vadd.f32 %v2307_v5, %v314_v8  ;;  %v1362_v11 = vpop.f32.mrb[31].mxu0  ;;  %1794 = vmatpush3.bf16.msra.mxu1 %v1769_v2 }
 0x13a   :  { %1459 = vmatmul.mubr.f32.gmra.mrb[24].mxu1 %v1831_v9  ;;  %1787 = vmatprep.subr.bf16.mxu1 %v2010_v1  ;;  %v874_v9 = vld [vmem:[#allocation4 + $0x50] sm:$0xff] }
 0x13b   :  { %1836 = vtanh.f32 %v315_v10  ;;  %1461 = vmatprep.mubr.msk.f32.mxu1 %vm2009_vm0, %v2008_v0  ;;  %v875_v10 = vld [vmem:[#allocation4 + $0x58] sm:$0xff] }
 0x13c   :  { %v319_v12 = vpop.f32.mrb[32].mxu0 }
 0x13d   :  { %v1833_v13 = vpop.eup %1832  ;;  %v320_v14 = vadd.f32 %v2307_v5, %v319_v12  ;;  %v1365_v15 = vpop.f32.mrb[33].mxu0  ;;  %1795 = vmatpush3.bf16.msra.mxu1 %v2398_v7 }
 0x13e   :  { %1462 = vmatmul.mubr.f32.gmra.mrb[26].mxu1 %v1833_v13  ;;  %1788 = vmatprep.subr.bf16.mxu1 %v2010_v1  ;;  %v2403_v13 = vpack.c.bf16 %v875_v10, %v874_v9 }
 0x13f   :  { %1838 = vtanh.f32 %v320_v14  ;;  %1464 = vmatprep.mubr.msk.f32.mxu1 %vm2009_vm0, %v2008_v0 }
 0x140   :  { %v324_v16 = vpop.f32.mrb[34].mxu0 }
 0x141   :  { %v1835_v17 = vpop.eup %1834  ;;  %v325_v18 = vadd.f32 %v2307_v5, %v324_v16  ;;  %v1368_v19 = vpop.f32.mrb[35].mxu0  ;;  %1796 = vmatpush3.bf16.msra.mxu1 %v2403_v13 }
 0x142   :  { %1465 = vmatmul.mubr.f32.gmra.mrb[28].mxu1 %v1835_v17  ;;  %1789 = vmatprep.subr.bf16.mxu1 %v2010_v1 }
 0x143   :  { %1840 = vtanh.f32 %v325_v18  ;;  %1467 = vmatprep.mubr.msk.f32.mxu1 %vm2009_vm0, %v2008_v0 }
 0x144   :  { %v329_v20 = vpop.f32.mrb[36].mxu0 }
 0x145   :  { %v1837_v21 = vpop.eup %1836  ;;  %v330_v22 = vadd.f32 %v2307_v5, %v329_v20  ;;  %v1371_v23 = vpop.f32.mrb[37].mxu0 }
 0x146   :  { %1468 = vmatmul.mubr.f32.gmra.mrb[30].mxu1 %v1837_v21 }
 0x147   :  { %1842 = vtanh.f32 %v330_v22  ;;  %1470 = vmatprep.mubr.msk.f32.mxu1 %vm2009_vm0, %v2008_v0 }
 0x148   :  { %v334_v24 = vpop.f32.mrb[38].mxu0 }
 0x149   :  { %v1839_v25 = vpop.eup %1838  ;;  %v335_v26 = vadd.f32 %v2307_v5, %v334_v24  ;;  %v1374_v27 = vpop.f32.mrb[39].mxu0 }
 0x14a   :  { %1471 = vmatmul.mubr.f32.gmra.mrb[32].mxu1 %v1839_v25 }
 0x14b   :  { %1844 = vtanh.f32 %v335_v26  ;;  %1473 = vmatprep.mubr.msk.f32.mxu1 %vm2009_vm0, %v2008_v0 }
 0x14c   :  { %v339_v28 = vpop.f32.mrb[40].mxu0 }
 0x14d   :  { %v1841_v29 = vpop.eup %1840  ;;  %v340_v30 = vadd.f32 %v2307_v5, %v339_v28  ;;  %v1377_v31 = vpop.f32.mrb[41].mxu0 }
 0x14e   :  { %1474 = vmatmul.mubr.f32.gmra.mrb[34].mxu1 %v1841_v29 }
 0x14f   :  { %1846 = vtanh.f32 %v340_v30  ;;  %1476 = vmatprep.mubr.msk.f32.mxu1 %vm2009_vm0, %v2008_v0 }
 0x150   :  { %v344_v32 = vpop.f32.mrb[42].mxu0 }
 0x151   :  { %v1843_v33 = vpop.eup %1842  ;;  %v345_v34 = vadd.f32 %v2307_v5, %v344_v32  ;;  %v1380_v35 = vpop.f32.mrb[43].mxu0 }
 0x152   :  { %1477 = vmatmul.mubr.f32.gmra.mrb[36].mxu1 %v1843_v33 }
 0x153   :  { %1848 = vtanh.f32 %v345_v34  ;;  %1479 = vmatprep.mubr.msk.f32.mxu1 %vm2009_vm0, %v2008_v0 }
 0x154   :  { %v349_v36 = vpop.f32.mrb[44].mxu0 }
 0x155   :  { %v1845_v37 = vpop.eup %1844  ;;  %v350_v38 = vadd.f32 %v2307_v5, %v349_v36  ;;  %v1383_v39 = vpop.f32.mrb[45].mxu0 }
 0x156   :  { %1480 = vmatmul.mubr.f32.gmra.mrb[38].mxu1 %v1845_v37 }
 0x157   :  { %1850 = vtanh.f32 %v350_v38  ;;  %1482 = vmatprep.mubr.msk.f32.mxu1 %vm2009_vm0, %v2008_v0 }
 0x158   :  { %v354_v40 = vpop.f32.mrb[46].mxu0 }
 0x159   :  { %v1847_v41 = vpop.eup %1846  ;;  %v355_v42 = vadd.f32 %v2307_v5, %v354_v40  ;;  %v1386_v43 = vpop.f32.mrb[47].mxu0 }
 0x15a   :  { %1483 = vmatmul.mubr.f32.gmra.mrb[40].mxu1 %v1847_v41 }
 0x15b   :  { %1852 = vtanh.f32 %v355_v42  ;;  %1485 = vmatprep.mubr.msk.f32.mxu1 %vm2009_vm0, %v2008_v0 }
 0x15c   :  { %v359_v44 = vpop.f32.mrb[48].mxu0 }
 0x15d   :  { %v1849_v45 = vpop.eup %1848  ;;  %v360_v46 = vadd.f32 %v2307_v5, %v359_v44  ;;  %v1389_v47 = vpop.f32.mrb[49].mxu0 }
 0x15e   :  { %1486 = vmatmul.mubr.f32.gmra.mrb[42].mxu1 %v1849_v45 }
 0x15f   :  { %1854 = vtanh.f32 %v360_v46  ;;  %1488 = vmatprep.mubr.msk.f32.mxu1 %vm2009_vm0, %v2008_v0 }
 0x161   :  { %v1851_v50 = vpop.eup %1850 }
 0x162   :  { %1489 = vmatmul.mubr.f32.gmra.mrb[44].mxu1 %v1851_v50 }
 0x163   :  { %1491 = vmatprep.mubr.msk.f32.mxu1 %vm2009_vm0, %v2008_v0 }
 0x165   :  { %v1853_v52 = vpop.eup %1852 }
 0x166   :  { %1492 = vmatmul.mubr.f32.gmra.mrb[46].mxu1 %v1853_v52 }
 0x167   :  { %1494 = vmatprep.mubr.msk.f32.mxu1 %vm2009_vm0, %v2008_v0 }
 0x169   :  { %v1855_v5 = vpop.eup %1854 }
 0x16a   :  { %1495 = vmatmul.mubr.f32.gmra.mrb[48].mxu1 %v1855_v5 }
 0x16b   :  { %1645 = vmatprep.mubr.msk.f32.mxu1 %vm2009_vm0, %v2008_v0 }
 0x1dd   :  { %v477_v8 = vpop.f32.mrb[0].mxu1 }
 0x1de   :  { %v478_v11 = vadd.f32 %v2395_v6, %v477_v8  ;;  %v1424_v12 = vpop.f32.mrb[1].mxu1 }
 0x1e0   :  { %1856 = vtanh.f32 %v478_v11 }
 0x1e1   :  { %v482_v14 = vpop.f32.mrb[2].mxu1 }
 0x1e2   :  { %v483_v15 = vadd.f32 %v2395_v6, %v482_v14  ;;  %v1427_v16 = vpop.f32.mrb[3].mxu1 }
 0x1e4   :  { %1858 = vtanh.f32 %v483_v15 }
 0x1e5   :  { %v487_v17 = vpop.f32.mrb[4].mxu1 }
 0x1e6   :  { %v488_v18 = vadd.f32 %v2395_v6, %v487_v17  ;;  %v1430_v19 = vpop.f32.mrb[5].mxu1 }
 0x1e8   :  { %1860 = vtanh.f32 %v488_v18 }
 0x1e9   :  { %v492_v20 = vpop.f32.mrb[6].mxu1 }
 0x1ea   :  { %v1857_v21 = vpop.eup %1856  ;;  %v493_v22 = vadd.f32 %v2395_v6, %v492_v20  ;;  %v1433_v23 = vpop.f32.mrb[7].mxu1 }
 0x1eb   :  { %1530 = vmatmul.mubr.f32.vlgmr.msra.gmra.mrb[50].mxu0 %v1857_v21 }
 0x1ec   :  { %1862 = vtanh.f32 %v493_v22  ;;  %1532 = vmatprep.mubr.msk.f32.mxu0 %vm2009_vm0, %v2008_v0  ;;  %1761 = vmatpush3.bf16.msra.mxu0 %v1760_v55 }
 0x1ed   :  { %v497_v24 = vpop.f32.mrb[8].mxu1  ;;  %1762 = vmatprep.subr.bf16.mxu0 %v2010_v1 }
 0x1ee   :  { %v1859_v25 = vpop.eup %1858  ;;  %v498_v26 = vadd.f32 %v2395_v6, %v497_v24  ;;  %v1436_v27 = vpop.f32.mrb[9].mxu1 }
 0x1ef   :  { %1533 = vmatmul.mubr.f32.gmra.mrb[52].mxu0 %v1859_v25 }
 0x1f0   :  { %1864 = vtanh.f32 %v498_v26  ;;  %1535 = vmatprep.mubr.msk.f32.mxu0 %vm2009_vm0, %v2008_v0  ;;  %1764 = vmatpush3.bf16.msra.mxu0 %v1763_v58 }
 0x1f1   :  { %v502_v28 = vpop.f32.mrb[10].mxu1  ;;  %1765 = vmatprep.subr.bf16.mxu0 %v2010_v1 }
 0x1f2   :  { %v1861_v29 = vpop.eup %1860  ;;  %v503_v30 = vadd.f32 %v2395_v6, %v502_v28  ;;  %v1439_v31 = vpop.f32.mrb[11].mxu1 }
 0x1f3   :  { %1536 = vmatmul.mubr.f32.gmra.mrb[54].mxu0 %v1861_v29 }
 0x1f4   :  { %1866 = vtanh.f32 %v503_v30  ;;  %1538 = vmatprep.mubr.msk.f32.mxu0 %vm2009_vm0, %v2008_v0  ;;  %1767 = vmatpush3.bf16.msra.mxu0 %v1766_v61 }
 0x1f5   :  { %v507_v32 = vpop.f32.mrb[12].mxu1  ;;  %1768 = vmatprep.subr.bf16.mxu0 %v2010_v1 }
 0x1f6   :  { %v1863_v33 = vpop.eup %1862  ;;  %v508_v34 = vadd.f32 %v2395_v6, %v507_v32  ;;  %v1442_v35 = vpop.f32.mrb[13].mxu1 }
 0x1f7   :  { %1539 = vmatmul.mubr.f32.gmra.mrb[56].mxu0 %v1863_v33 }
 0x1f8   :  { %1868 = vtanh.f32 %v508_v34  ;;  %1541 = vmatprep.mubr.msk.f32.mxu0 %vm2009_vm0, %v2008_v0  ;;  %1770 = vmatpush3.bf16.msra.mxu0 %v1769_v2 }
 0x1f9   :  { %v512_v36 = vpop.f32.mrb[14].mxu1  ;;  %1771 = vmatprep.subr.bf16.mxu0 %v2010_v1 }
 0x1fa   :  { %v1865_v37 = vpop.eup %1864  ;;  %v513_v38 = vadd.f32 %v2395_v6, %v512_v36  ;;  %v1445_v39 = vpop.f32.mrb[15].mxu1 }
 0x1fb   :  { %1542 = vmatmul.mubr.f32.gmra.mrb[58].mxu0 %v1865_v37 }
 0x1fc   :  { %1870 = vtanh.f32 %v513_v38  ;;  %1544 = vmatprep.mubr.msk.f32.mxu0 %vm2009_vm0, %v2008_v0  ;;  %1773 = vmatpush3.bf16.msra.mxu0 %v2398_v7 }
 0x1fd   :  { %v517_v40 = vpop.f32.mrb[16].mxu1  ;;  %1774 = vmatprep.subr.bf16.mxu0 %v2010_v1 }
 0x1fe   :  { %v1867_v41 = vpop.eup %1866  ;;  %v518_v42 = vadd.f32 %v2395_v6, %v517_v40  ;;  %v1448_v43 = vpop.f32.mrb[17].mxu1 }
 0x1ff   :  { %1545 = vmatmul.mubr.f32.gmra.mrb[60].mxu0 %v1867_v41 }
 0x200   :  { %1872 = vtanh.f32 %v518_v42  ;;  %1547 = vmatprep.mubr.msk.f32.mxu0 %vm2009_vm0, %v2008_v0  ;;  %1776 = vmatpush3.bf16.msra.mxu0 %v2403_v13 }
 0x201   :  { %v522_v44 = vpop.f32.mrb[18].mxu1  ;;  %1777 = vmatprep.subr.bf16.mxu0 %v2010_v1 }
 0x202   :  { %v1869_v45 = vpop.eup %1868  ;;  %v523_v46 = vadd.f32 %v2395_v6, %v522_v44  ;;  %v1451_v47 = vpop.f32.mrb[19].mxu1 }
 0x203   :  { %1548 = vmatmul.mubr.f32.gmra.mrb[62].mxu0 %v1869_v45  ;;  %v876_v47 = vld [vmem:[#allocation4 + $0x60] sm:$0xff] }
 0x204   :  { %1874 = vtanh.f32 %v523_v46  ;;  %1550 = vmatprep.mubr.msk.f32.mxu0 %vm2009_vm0, %v2008_v0 }
 0x205   :  { %v527_v48 = vpop.f32.mrb[20].mxu1 }
 0x206   :  { %v1871_v49 = vpop.eup %1870  ;;  %v528_v50 = vadd.f32 %v2395_v6, %v527_v48  ;;  %v1454_v51 = vpop.f32.mrb[21].mxu1  ;;  %v877_v48 = vld [vmem:[#allocation4 + $0x68] sm:$0xff] }
 0x207   :  { %1551 = vmatmul.mubr.f32.gmra.mrb[64].mxu0 %v1871_v49 }
 0x208   :  { %1876 = vtanh.f32 %v528_v50  ;;  %1553 = vmatprep.mubr.msk.f32.mxu0 %vm2009_vm0, %v2008_v0  ;;  %v1778_v50 = vpack.c.bf16 %v877_v48, %v876_v47 }
 0x209   :  { %v532_v52 = vpop.f32.mrb[22].mxu1 }
 0x20a   :  { %v1873_v5 = vpop.eup %1872  ;;  %v533_v53 = vadd.f32 %v2395_v6, %v532_v52  ;;  %v1457_v54 = vpop.f32.mrb[23].mxu1  ;;  %1797 = vmatpush3.bf16.msra.mxu1 %v1778_v50  ;;  %1779 = vmatpush3.bf16.msra.mxu0 %v1778_v50  ;;  %v879_v52 = vld [vmem:[#allocation4 + $0x78] sm:$0xff] }
 0x20b   :  { %1554 = vmatmul.mubr.f32.gmra.mrb[66].mxu0 %v1873_v5  ;;  %1790 = vmatprep.subr.bf16.mxu1 %v2010_v1  ;;  %v2494_v54 = vld [vmem:[%s2703_s6] ss:$0 sm:$0xff] }
 0x20c   :  { %1878 = vtanh.f32 %v533_v53  ;;  %1556 = vmatprep.mubr.msk.f32.mxu0 %vm2009_vm0, %v2008_v0  ;;  %1780 = vmatprep.subr.bf16.mxu0 %v2010_v1 }
 0x20d   :  { %v537_v55 = vpop.f32.mrb[24].mxu1 }
 0x20e   :  { %v1875_v56 = vpop.eup %1874  ;;  %v538_v57 = vadd.f32 %v2395_v6, %v537_v55  ;;  %v1460_v58 = vpop.f32.mrb[25].mxu1 }
 0x20f   :  { %1557 = vmatmul.mubr.f32.gmra.mrb[68].mxu0 %v1875_v56 }
 0x210   :  { %1880 = vtanh.f32 %v538_v57  ;;  %1559 = vmatprep.mubr.msk.f32.mxu0 %vm2009_vm0, %v2008_v0 }
 0x211   :  { %v542_v59 = vpop.f32.mrb[26].mxu1 }
 0x212   :  { %v1877_v60 = vpop.eup %1876  ;;  %v543_v61 = vadd.f32 %v2395_v6, %v542_v59  ;;  %v1463_v62 = vpop.f32.mrb[27].mxu1 }
 0x213   :  { %1560 = vmatmul.mubr.f32.gmra.mrb[70].mxu0 %v1877_v60 }
 0x214   :  { %1882 = vtanh.f32 %v543_v61  ;;  %1562 = vmatprep.mubr.msk.f32.mxu0 %vm2009_vm0, %v2008_v0 }
 0x215   :  { %v547_v63 = vpop.f32.mrb[28].mxu1 }
 0x216   :  { %v1879_v2 = vpop.eup %1878  ;;  %v548_v3 = vadd.f32 %v2395_v6, %v547_v63  ;;  %v1466_v4 = vpop.f32.mrb[29].mxu1 }
 0x217   :  { %1563 = vmatmul.mubr.f32.gmra.mrb[72].mxu0 %v1879_v2 }
 0x218   :  { %1884 = vtanh.f32 %v548_v3  ;;  %1565 = vmatprep.mubr.msk.f32.mxu0 %vm2009_vm0, %v2008_v0 }
 0x219   :  { %v552_v7 = vpop.f32.mrb[30].mxu1 }
 0x21a   :  { %v1881_v8 = vpop.eup %1880  ;;  %v553_v9 = vadd.f32 %v2395_v6, %v552_v7  ;;  %v1469_v10 = vpop.f32.mrb[31].mxu1 }
 0x21b   :  { %1566 = vmatmul.mubr.f32.gmra.mrb[74].mxu0 %v1881_v8 }
 0x21c   :  { %1886 = vtanh.f32 %v553_v9  ;;  %1568 = vmatprep.mubr.msk.f32.mxu0 %vm2009_vm0, %v2008_v0 }
 0x21d   :  { %v557_v11 = vpop.f32.mrb[32].mxu1 }
 0x21e   :  { %v1883_v12 = vpop.eup %1882  ;;  %v558_v13 = vadd.f32 %v2395_v6, %v557_v11  ;;  %v1472_v14 = vpop.f32.mrb[33].mxu1 }
 0x21f   :  { %1569 = vmatmul.mubr.f32.gmra.mrb[76].mxu0 %v1883_v12 }
 0x220   :  { %1888 = vtanh.f32 %v558_v13  ;;  %1571 = vmatprep.mubr.msk.f32.mxu0 %vm2009_vm0, %v2008_v0 }
 0x221   :  { %v562_v15 = vpop.f32.mrb[34].mxu1 }
 0x222   :  { %v1885_v16 = vpop.eup %1884  ;;  %v563_v17 = vadd.f32 %v2395_v6, %v562_v15  ;;  %v1475_v18 = vpop.f32.mrb[35].mxu1 }
 0x223   :  { %1572 = vmatmul.mubr.f32.gmra.mrb[78].mxu0 %v1885_v16 }
 0x224   :  { %1890 = vtanh.f32 %v563_v17  ;;  %1574 = vmatprep.mubr.msk.f32.mxu0 %vm2009_vm0, %v2008_v0 }
 0x225   :  { %v567_v19 = vpop.f32.mrb[36].mxu1 }
 0x226   :  { %v1887_v20 = vpop.eup %1886  ;;  %v568_v21 = vadd.f32 %v2395_v6, %v567_v19  ;;  %v1478_v22 = vpop.f32.mrb[37].mxu1 }
 0x227   :  { %1575 = vmatmul.mubr.f32.gmra.mrb[80].mxu0 %v1887_v20 }
 0x228   :  { %1892 = vtanh.f32 %v568_v21  ;;  %1577 = vmatprep.mubr.msk.f32.mxu0 %vm2009_vm0, %v2008_v0 }
 0x229   :  { %v572_v23 = vpop.f32.mrb[38].mxu1 }
 0x22a   :  { %v1889_v24 = vpop.eup %1888  ;;  %v573_v25 = vadd.f32 %v2395_v6, %v572_v23  ;;  %v1481_v26 = vpop.f32.mrb[39].mxu1 }
 0x22b   :  { %1578 = vmatmul.mubr.f32.gmra.mrb[82].mxu0 %v1889_v24 }
 0x22c   :  { %1894 = vtanh.f32 %v573_v25  ;;  %1580 = vmatprep.mubr.msk.f32.mxu0 %vm2009_vm0, %v2008_v0 }
 0x22d   :  { %v577_v27 = vpop.f32.mrb[40].mxu1 }
 0x22e   :  { %v1891_v28 = vpop.eup %1890  ;;  %v578_v29 = vadd.f32 %v2395_v6, %v577_v27  ;;  %v1484_v30 = vpop.f32.mrb[41].mxu1 }
 0x22f   :  { %1581 = vmatmul.mubr.f32.gmra.mrb[84].mxu0 %v1891_v28 }
 0x230   :  { %1896 = vtanh.f32 %v578_v29  ;;  %1583 = vmatprep.mubr.msk.f32.mxu0 %vm2009_vm0, %v2008_v0 }
 0x231   :  { %v582_v31 = vpop.f32.mrb[42].mxu1 }
 0x232   :  { %v1893_v32 = vpop.eup %1892  ;;  %v583_v33 = vadd.f32 %v2395_v6, %v582_v31  ;;  %v1487_v34 = vpop.f32.mrb[43].mxu1 }
 0x233   :  { %1584 = vmatmul.mubr.f32.gmra.mrb[86].mxu0 %v1893_v32 }
 0x234   :  { %1898 = vtanh.f32 %v583_v33  ;;  %1586 = vmatprep.mubr.msk.f32.mxu0 %vm2009_vm0, %v2008_v0 }
 0x235   :  { %v587_v35 = vpop.f32.mrb[44].mxu1 }
 0x236   :  { %v1895_v36 = vpop.eup %1894  ;;  %v588_v37 = vadd.f32 %v2395_v6, %v587_v35  ;;  %v1490_v38 = vpop.f32.mrb[45].mxu1 }
 0x237   :  { %1587 = vmatmul.mubr.f32.gmra.mrb[88].mxu0 %v1895_v36 }
 0x238   :  { %1900 = vtanh.f32 %v588_v37  ;;  %1589 = vmatprep.mubr.msk.f32.mxu0 %vm2009_vm0, %v2008_v0 }
 0x239   :  { %v592_v39 = vpop.f32.mrb[46].mxu1 }
 0x23a   :  { %v1897_v40 = vpop.eup %1896  ;;  %v593_v41 = vadd.f32 %v2395_v6, %v592_v39  ;;  %v1493_v42 = vpop.f32.mrb[47].mxu1 }
 0x23b   :  { %1590 = vmatmul.mubr.f32.gmra.mrb[90].mxu0 %v1897_v40 }
 0x23c   :  { %1902 = vtanh.f32 %v593_v41  ;;  %1592 = vmatprep.mubr.msk.f32.mxu0 %vm2009_vm0, %v2008_v0 }
 0x23d   :  { %v597_v43 = vpop.f32.mrb[48].mxu1 }
 0x23e   :  { %v1899_v44 = vpop.eup %1898  ;;  %v598_v45 = vadd.f32 %v2395_v6, %v597_v43  ;;  %v1496_v46 = vpop.f32.mrb[49].mxu1  ;;  %v878_v6 = vld [vmem:[#allocation4 + $0x70] sm:$0xff] }
 0x23f   :  { %1593 = vmatmul.mubr.f32.gmra.mrb[92].mxu0 %v1899_v44  ;;  %v1781_v5 = vpack.c.bf16 %v879_v52, %v878_v6 }
 0x240   :  { %1904 = vtanh.f32 %v598_v45  ;;  %1595 = vmatprep.mubr.msk.f32.mxu0 %vm2009_vm0, %v2008_v0 }
 0x241   :  { %1782 = vmatpush3.bf16.msra.mxu0 %v1781_v5  ;;  %1798 = vmatpush3.bf16.msra.mxu1 %v1781_v5 }
 0x242   :  { %v1901_v49 = vpop.eup %1900 }
 0x243   :  { %1596 = vmatmul.mubr.f32.gmra.mrb[94].mxu0 %v1901_v49 }
 0x244   :  { %1598 = vmatprep.mubr.msk.f32.mxu0 %vm2009_vm0, %v2008_v0 }
 0x246   :  { %v1903_v51 = vpop.eup %1902 }
 0x247   :  { %1599 = vmatmul.mubr.f32.gmra.mrb[96].mxu0 %v1903_v51 }
 0x248   :  { %1601 = vmatprep.mubr.msk.f32.mxu0 %vm2009_vm0, %v2008_v0 }
 0x24a   :  { %v1905_v53 = vpop.eup %1904 }
 0x24b   :  { %1602 = vmatmul.mubr.f32.gmra.mrb[98].mxu0 %v1905_v53 }
 0x24c   :  { %1636 = vmatprep.mubr.msk.f32.mxu0 %vm2009_vm0, %v2008_v0 }
 0x2be   :  { %v715_v1 = vpop.f32.mrb[50].mxu0 }
 0x2bf   :  { %v716_v55 = vadd.f32 %v2494_v54, %v715_v1  ;;  %v1531_v56 = vpop.f32.mrb[51].mxu0 }
 0x2c1   :  { %1906 = vtanh.f32 %v716_v55 }
 0x2c2   :  { %v720_v57 = vpop.f32.mrb[52].mxu0 }
 0x2c3   :  { %v721_v58 = vadd.f32 %v2494_v54, %v720_v57  ;;  %v1534_v59 = vpop.f32.mrb[53].mxu0 }
 0x2c5   :  { %1908 = vtanh.f32 %v721_v58 }
 0x2c6   :  { %v725_v60 = vpop.f32.mrb[54].mxu0 }
 0x2c7   :  { %v726_v61 = vadd.f32 %v2494_v54, %v725_v60  ;;  %v1537_v62 = vpop.f32.mrb[55].mxu0 }
 0x2c9   :  { %1910 = vtanh.f32 %v726_v61 }
 0x2ca   :  { %v730_v63 = vpop.f32.mrb[56].mxu0 }
 0x2cb   :  { %v1907_v2 = vpop.eup %1906  ;;  %v731_v3 = vadd.f32 %v2494_v54, %v730_v63  ;;  %v1540_v4 = vpop.f32.mrb[57].mxu0 }
 0x2cc   :  { %1637 = vmatmul.mubr.f32.vlgmr.msra.gmra.mrb[100].mxu0 %v1907_v2 }
 0x2cd   :  { %1912 = vtanh.f32 %v731_v3  ;;  %1639 = vmatprep.mubr.msk.f32.mxu0 %vm2009_vm0, %v2008_v0 }
 0x2ce   :  { %v735_v7 = vpop.f32.mrb[58].mxu0 }
 0x2cf   :  { %v1909_v8 = vpop.eup %1908  ;;  %v736_v9 = vadd.f32 %v2494_v54, %v735_v7  ;;  %v1543_v10 = vpop.f32.mrb[59].mxu0 }
 0x2d0   :  { %1640 = vmatmul.mubr.f32.gmra.mrb[102].mxu0 %v1909_v8 }
 0x2d1   :  { %1914 = vtanh.f32 %v736_v9  ;;  %1642 = vmatprep.mubr.msk.f32.mxu0 %vm2009_vm0, %v2008_v0 }
 0x2d2   :  { %v740_v11 = vpop.f32.mrb[60].mxu0 }
 0x2d3   :  { %v1911_v12 = vpop.eup %1910  ;;  %v741_v13 = vadd.f32 %v2494_v54, %v740_v11  ;;  %v1546_v14 = vpop.f32.mrb[61].mxu0 }
 0x2d4   :  { %1643 = vmatmul.mubr.f32.gmra.mrb[104].mxu0 %v1911_v12 }
 0x2d5   :  { %1916 = vtanh.f32 %v741_v13 }
 0x2d6   :  { %v745_v15 = vpop.f32.mrb[62].mxu0 }
 0x2d7   :  { %v1913_v16 = vpop.eup %1912  ;;  %v746_v17 = vadd.f32 %v2494_v54, %v745_v15  ;;  %v1549_v18 = vpop.f32.mrb[63].mxu0 }
 0x2d8   :  { %1646 = vmatmul.mubr.f32.vlgmr.msra.gmra.mrb[50].mxu1 %v1913_v16 }
 0x2d9   :  { %1918 = vtanh.f32 %v746_v17  ;;  %1648 = vmatprep.mubr.msk.f32.mxu1 %vm2009_vm0, %v2008_v0 }
 0x2da   :  { %v750_v19 = vpop.f32.mrb[64].mxu0 }
 0x2db   :  { %v1915_v20 = vpop.eup %1914  ;;  %v751_v21 = vadd.f32 %v2494_v54, %v750_v19  ;;  %v1552_v22 = vpop.f32.mrb[65].mxu0 }
 0x2dc   :  { %1649 = vmatmul.mubr.f32.gmra.mrb[52].mxu1 %v1915_v20 }
 0x2dd   :  { %1920 = vtanh.f32 %v751_v21  ;;  %1651 = vmatprep.mubr.msk.f32.mxu1 %vm2009_vm0, %v2008_v0 }
 0x2de   :  { %v755_v23 = vpop.f32.mrb[66].mxu0 }
 0x2df   :  { %v1917_v24 = vpop.eup %1916  ;;  %v756_v25 = vadd.f32 %v2494_v54, %v755_v23  ;;  %v1555_v26 = vpop.f32.mrb[67].mxu0 }
 0x2e0   :  { %1652 = vmatmul.mubr.f32.gmra.mrb[54].mxu1 %v1917_v24 }
 0x2e1   :  { %1922 = vtanh.f32 %v756_v25  ;;  %1654 = vmatprep.mubr.msk.f32.mxu1 %vm2009_vm0, %v2008_v0 }
 0x2e2   :  { %v760_v27 = vpop.f32.mrb[68].mxu0 }
 0x2e3   :  { %v1919_v28 = vpop.eup %1918  ;;  %v761_v29 = vadd.f32 %v2494_v54, %v760_v27  ;;  %v1558_v30 = vpop.f32.mrb[69].mxu0 }
 0x2e4   :  { %1655 = vmatmul.mubr.f32.gmra.mrb[56].mxu1 %v1919_v28 }
 0x2e5   :  { %1924 = vtanh.f32 %v761_v29  ;;  %1657 = vmatprep.mubr.msk.f32.mxu1 %vm2009_vm0, %v2008_v0 }
 0x2e6   :  { %v765_v31 = vpop.f32.mrb[70].mxu0 }
 0x2e7   :  { %v1921_v32 = vpop.eup %1920  ;;  %v766_v33 = vadd.f32 %v2494_v54, %v765_v31  ;;  %v1561_v34 = vpop.f32.mrb[71].mxu0 }
 0x2e8   :  { %1658 = vmatmul.mubr.f32.gmra.mrb[58].mxu1 %v1921_v32 }
 0x2e9   :  { %1926 = vtanh.f32 %v766_v33  ;;  %1660 = vmatprep.mubr.msk.f32.mxu1 %vm2009_vm0, %v2008_v0 }
 0x2ea   :  { %v770_v35 = vpop.f32.mrb[72].mxu0 }
 0x2eb   :  { %v1923_v36 = vpop.eup %1922  ;;  %v771_v37 = vadd.f32 %v2494_v54, %v770_v35  ;;  %v1564_v38 = vpop.f32.mrb[73].mxu0 }
 0x2ec   :  { %1661 = vmatmul.mubr.f32.gmra.mrb[60].mxu1 %v1923_v36 }
 0x2ed   :  { %1928 = vtanh.f32 %v771_v37  ;;  %1663 = vmatprep.mubr.msk.f32.mxu1 %vm2009_vm0, %v2008_v0 }
 0x2ee   :  { %v775_v39 = vpop.f32.mrb[74].mxu0 }
 0x2ef   :  { %v1925_v40 = vpop.eup %1924  ;;  %v776_v41 = vadd.f32 %v2494_v54, %v775_v39  ;;  %v1567_v42 = vpop.f32.mrb[75].mxu0 }
 0x2f0   :  { %1664 = vmatmul.mubr.f32.gmra.mrb[62].mxu1 %v1925_v40 }
 0x2f1   :  { %1930 = vtanh.f32 %v776_v41  ;;  %1666 = vmatprep.mubr.msk.f32.mxu1 %vm2009_vm0, %v2008_v0 }
 0x2f2   :  { %v780_v43 = vpop.f32.mrb[76].mxu0 }
 0x2f3   :  { %v1927_v44 = vpop.eup %1926  ;;  %v781_v45 = vadd.f32 %v2494_v54, %v780_v43  ;;  %v1570_v46 = vpop.f32.mrb[77].mxu0 }
 0x2f4   :  { %1667 = vmatmul.mubr.f32.gmra.mrb[64].mxu1 %v1927_v44 }
 0x2f5   :  { %1932 = vtanh.f32 %v781_v45  ;;  %1669 = vmatprep.mubr.msk.f32.mxu1 %vm2009_vm0, %v2008_v0 }
 0x2f6   :  { %v785_v47 = vpop.f32.mrb[78].mxu0 }
 0x2f7   :  { %v1929_v48 = vpop.eup %1928  ;;  %v786_v49 = vadd.f32 %v2494_v54, %v785_v47  ;;  %v1573_v50 = vpop.f32.mrb[79].mxu0 }
 0x2f8   :  { %1670 = vmatmul.mubr.f32.gmra.mrb[66].mxu1 %v1929_v48 }
 0x2f9   :  { %1934 = vtanh.f32 %v786_v49  ;;  %1672 = vmatprep.mubr.msk.f32.mxu1 %vm2009_vm0, %v2008_v0 }
 0x2fa   :  { %v790_v51 = vpop.f32.mrb[80].mxu0 }
 0x2fb   :  { %v1931_v6 = vpop.eup %1930  ;;  %v791_v52 = vadd.f32 %v2494_v54, %v790_v51  ;;  %v1576_v5 = vpop.f32.mrb[81].mxu0 }
 0x2fc   :  { %1673 = vmatmul.mubr.f32.gmra.mrb[68].mxu1 %v1931_v6 }
 0x2fd   :  { %1936 = vtanh.f32 %v791_v52  ;;  %1675 = vmatprep.mubr.msk.f32.mxu1 %vm2009_vm0, %v2008_v0 }
 0x2fe   :  { %v795_v53 = vpop.f32.mrb[82].mxu0 }
 0x2ff   :  { %v1933_v1 = vpop.eup %1932  ;;  %v796_v55 = vadd.f32 %v2494_v54, %v795_v53  ;;  %v1579_v56 = vpop.f32.mrb[83].mxu0 }
 0x300   :  { %1676 = vmatmul.mubr.f32.gmra.mrb[70].mxu1 %v1933_v1 }
 0x301   :  { %1938 = vtanh.f32 %v796_v55  ;;  %1678 = vmatprep.mubr.msk.f32.mxu1 %vm2009_vm0, %v2008_v0 }
 0x302   :  { %v800_v57 = vpop.f32.mrb[84].mxu0 }
 0x303   :  { %v1935_v58 = vpop.eup %1934  ;;  %v801_v59 = vadd.f32 %v2494_v54, %v800_v57  ;;  %v1582_v60 = vpop.f32.mrb[85].mxu0 }
 0x304   :  { %1679 = vmatmul.mubr.f32.gmra.mrb[72].mxu1 %v1935_v58 }
 0x305   :  { %1940 = vtanh.f32 %v801_v59  ;;  %1681 = vmatprep.mubr.msk.f32.mxu1 %vm2009_vm0, %v2008_v0 }
 0x306   :  { %v805_v61 = vpop.f32.mrb[86].mxu0 }
 0x307   :  { %v1937_v62 = vpop.eup %1936  ;;  %v806_v63 = vadd.f32 %v2494_v54, %v805_v61  ;;  %v1585_v2 = vpop.f32.mrb[87].mxu0 }
 0x308   :  { %1682 = vmatmul.mubr.f32.gmra.mrb[74].mxu1 %v1937_v62 }
 0x309   :  { %1942 = vtanh.f32 %v806_v63  ;;  %1684 = vmatprep.mubr.msk.f32.mxu1 %vm2009_vm0, %v2008_v0 }
 0x30a   :  { %v810_v3 = vpop.f32.mrb[88].mxu0 }
 0x30b   :  { %v1939_v4 = vpop.eup %1938  ;;  %v811_v7 = vadd.f32 %v2494_v54, %v810_v3  ;;  %v1588_v8 = vpop.f32.mrb[89].mxu0 }
 0x30c   :  { %1685 = vmatmul.mubr.f32.gmra.mrb[76].mxu1 %v1939_v4 }
 0x30d   :  { %1944 = vtanh.f32 %v811_v7  ;;  %1687 = vmatprep.mubr.msk.f32.mxu1 %vm2009_vm0, %v2008_v0 }
 0x30e   :  { %v815_v9 = vpop.f32.mrb[90].mxu0 }
 0x30f   :  { %v1941_v10 = vpop.eup %1940  ;;  %v816_v11 = vadd.f32 %v2494_v54, %v815_v9  ;;  %v1591_v12 = vpop.f32.mrb[91].mxu0 }
 0x310   :  { %1688 = vmatmul.mubr.f32.gmra.mrb[78].mxu1 %v1941_v10 }
 0x311   :  { %1946 = vtanh.f32 %v816_v11  ;;  %1690 = vmatprep.mubr.msk.f32.mxu1 %vm2009_vm0, %v2008_v0 }
 0x312   :  { %v820_v13 = vpop.f32.mrb[92].mxu0 }
 0x313   :  { %v1943_v14 = vpop.eup %1942  ;;  %v821_v15 = vadd.f32 %v2494_v54, %v820_v13  ;;  %v1594_v16 = vpop.f32.mrb[93].mxu0 }
 0x314   :  { %1691 = vmatmul.mubr.f32.gmra.mrb[80].mxu1 %v1943_v14 }
 0x315   :  { %1948 = vtanh.f32 %v821_v15  ;;  %1693 = vmatprep.mubr.msk.f32.mxu1 %vm2009_vm0, %v2008_v0 }
 0x316   :  { %v825_v17 = vpop.f32.mrb[94].mxu0 }
 0x317   :  { %v1945_v18 = vpop.eup %1944  ;;  %v826_v19 = vadd.f32 %v2494_v54, %v825_v17  ;;  %v1597_v20 = vpop.f32.mrb[95].mxu0 }
 0x318   :  { %1694 = vmatmul.mubr.f32.gmra.mrb[82].mxu1 %v1945_v18 }
 0x319   :  { %1950 = vtanh.f32 %v826_v19  ;;  %1696 = vmatprep.mubr.msk.f32.mxu1 %vm2009_vm0, %v2008_v0 }
 0x31a   :  { %v830_v21 = vpop.f32.mrb[96].mxu0 }
 0x31b   :  { %v1947_v22 = vpop.eup %1946  ;;  %v831_v23 = vadd.f32 %v2494_v54, %v830_v21  ;;  %v1600_v24 = vpop.f32.mrb[97].mxu0 }
 0x31c   :  { %1697 = vmatmul.mubr.f32.gmra.mrb[84].mxu1 %v1947_v22 }
 0x31d   :  { %1952 = vtanh.f32 %v831_v23  ;;  %1699 = vmatprep.mubr.msk.f32.mxu1 %vm2009_vm0, %v2008_v0 }
 0x31e   :  { %v835_v25 = vpop.f32.mrb[98].mxu0 }
 0x31f   :  { %v1949_v26 = vpop.eup %1948  ;;  %v836_v27 = vadd.f32 %v2494_v54, %v835_v25  ;;  %v1603_v28 = vpop.f32.mrb[99].mxu0  ;;  %v2570_v54 = vld [vmem:[%s2705_s8] ss:$0 sm:$0xff] }
 0x320   :  { %1700 = vmatmul.mubr.f32.gmra.mrb[86].mxu1 %v1949_v26 }
 0x321   :  { %1954 = vtanh.f32 %v836_v27  ;;  %1702 = vmatprep.mubr.msk.f32.mxu1 %vm2009_vm0, %v2008_v0 }
 0x323   :  { %v1951_v29 = vpop.eup %1950 }
 0x324   :  { %1703 = vmatmul.mubr.f32.gmra.mrb[88].mxu1 %v1951_v29 }
 0x325   :  { %1705 = vmatprep.mubr.msk.f32.mxu1 %vm2009_vm0, %v2008_v0 }
 0x327   :  { %v1953_v30 = vpop.eup %1952 }
 0x328   :  { %1706 = vmatmul.mubr.f32.gmra.mrb[90].mxu1 %v1953_v30 }
 0x329   :  { %1708 = vmatprep.mubr.msk.f32.mxu1 %vm2009_vm0, %v2008_v0 }
 0x32b   :  { %v1955_v31 = vpop.eup %1954 }
 0x32c   :  { %1709 = vmatmul.mubr.f32.gmra.mrb[92].mxu1 %v1955_v31 }
 0x39f   :  { %v946_v32 = vpop.f32.mrb[100].mxu0 }
 0x3a0   :  { %v1077_v33 = vadd.f32 %v2570_v54, %v946_v32  ;;  %v1638_v34 = vpop.f32.mrb[101].mxu0 }
 0x3a2   :  { %1103 = vst.msk [vmem:[%s2706_s9] sm:$0xff] %vm1102_vm3, %v1077_v33 }
 0x3a3   :  { %v951_v35 = vpop.f32.mrb[102].mxu0 }
 0x3a4   :  { %v1078_v0 = vadd.f32 %v2570_v54, %v951_v35  ;;  %v1641_v36 = vpop.f32.mrb[103].mxu0 }
 0x3a6   :  { %1104 = vst.msk [vmem:[%s2706_s9 + $0x8] sm:$0xff] %vm1102_vm3, %v1078_v0 }
 0x3a7   :  { %v956_v37 = vpop.f32.mrb[104].mxu0 }
 0x3a8   :  { %v1079_v38 = vadd.f32 %v2570_v54, %v956_v37  ;;  %v1644_v39 = vpop.f32.mrb[105].mxu0 }
 0x3aa   :  { %1105 = vst.msk [vmem:[%s2706_s9 + $0x10] sm:$0xff] %vm1102_vm3, %v1079_v38 }
 0x3ab   :  { %v961_v40 = vpop.f32.mrb[50].mxu1 }
 0x3ac   :  { %v1080_v41 = vadd.f32 %v2570_v54, %v961_v40  ;;  %v1647_v42 = vpop.f32.mrb[51].mxu1 }
 0x3ae   :  { %1106 = vst.msk [vmem:[%s2706_s9 + $0x18] sm:$0xff] %vm1102_vm3, %v1080_v41 }
 0x3af   :  { %v966_v43 = vpop.f32.mrb[52].mxu1 }
 0x3b0   :  { %v1081_v44 = vadd.f32 %v2570_v54, %v966_v43  ;;  %v1650_v45 = vpop.f32.mrb[53].mxu1 }
 0x3b2   :  { %1107 = vst.msk [vmem:[%s2706_s9 + $0x20] sm:$0xff] %vm1102_vm3, %v1081_v44 }
 0x3b3   :  { %v971_v46 = vpop.f32.mrb[54].mxu1 }
 0x3b4   :  { %v1082_v47 = vadd.f32 %v2570_v54, %v971_v46  ;;  %v1653_v48 = vpop.f32.mrb[55].mxu1 }
 0x3b6   :  { %1108 = vst.msk [vmem:[%s2706_s9 + $0x28] sm:$0xff] %vm1102_vm3, %v1082_v47 }
 0x3b7   :  { %v976_v49 = vpop.f32.mrb[56].mxu1 }
 0x3b8   :  { %v1083_v50 = vadd.f32 %v2570_v54, %v976_v49  ;;  %v1656_v51 = vpop.f32.mrb[57].mxu1 }
 0x3ba   :  { %1109 = vst.msk [vmem:[%s2706_s9 + $0x30] sm:$0xff] %vm1102_vm3, %v1083_v50 }
 0x3bb   :  { %v981_v6 = vpop.f32.mrb[58].mxu1 }
 0x3bc   :  { %v1084_v52 = vadd.f32 %v2570_v54, %v981_v6  ;;  %v1659_v5 = vpop.f32.mrb[59].mxu1 }
 0x3be   :  { %1110 = vst.msk [vmem:[%s2706_s9 + $0x38] sm:$0xff] %vm1102_vm3, %v1084_v52 }
 0x3bf   :  { %v986_v53 = vpop.f32.mrb[60].mxu1 }
 0x3c0   :  { %v1085_v1 = vadd.f32 %v2570_v54, %v986_v53  ;;  %v1662_v55 = vpop.f32.mrb[61].mxu1 }
 0x3c2   :  { %1111 = vst.msk [vmem:[%s2706_s9 + $0x40] sm:$0xff] %vm1102_vm3, %v1085_v1 }
 0x3c3   :  { %v991_v56 = vpop.f32.mrb[62].mxu1 }
 0x3c4   :  { %v1086_v57 = vadd.f32 %v2570_v54, %v991_v56  ;;  %v1665_v58 = vpop.f32.mrb[63].mxu1 }
 0x3c6   :  { %1112 = vst.msk [vmem:[%s2706_s9 + $0x48] sm:$0xff] %vm1102_vm3, %v1086_v57 }
 0x3c7   :  { %v996_v59 = vpop.f32.mrb[64].mxu1 }
 0x3c8   :  { %v1087_v60 = vadd.f32 %v2570_v54, %v996_v59  ;;  %v1668_v61 = vpop.f32.mrb[65].mxu1 }
 0x3ca   :  { %1113 = vst.msk [vmem:[%s2706_s9 + $0x50] sm:$0xff] %vm1102_vm3, %v1087_v60 }
 0x3cb   :  { %v1001_v62 = vpop.f32.mrb[66].mxu1 }
 0x3cc   :  { %v1088_v63 = vadd.f32 %v2570_v54, %v1001_v62  ;;  %v1671_v2 = vpop.f32.mrb[67].mxu1 }
 0x3ce   :  { %1114 = vst.msk [vmem:[%s2706_s9 + $0x58] sm:$0xff] %vm1102_vm3, %v1088_v63 }
 0x3cf   :  { %v1006_v3 = vpop.f32.mrb[68].mxu1 }
 0x3d0   :  { %v1089_v4 = vadd.f32 %v2570_v54, %v1006_v3  ;;  %v1674_v7 = vpop.f32.mrb[69].mxu1 }
 0x3d2   :  { %1115 = vst.msk [vmem:[%s2706_s9 + $0x60] sm:$0xff] %vm1102_vm3, %v1089_v4 }
 0x3d3   :  { %v1011_v8 = vpop.f32.mrb[70].mxu1 }
 0x3d4   :  { %v1090_v9 = vadd.f32 %v2570_v54, %v1011_v8  ;;  %v1677_v10 = vpop.f32.mrb[71].mxu1 }
 0x3d6   :  { %1116 = vst.msk [vmem:[%s2706_s9 + $0x68] sm:$0xff] %vm1102_vm3, %v1090_v9 }
 0x3d7   :  { %v1016_v11 = vpop.f32.mrb[72].mxu1 }
 0x3d8   :  { %v1091_v12 = vadd.f32 %v2570_v54, %v1016_v11  ;;  %v1680_v13 = vpop.f32.mrb[73].mxu1 }
 0x3da   :  { %1117 = vst.msk [vmem:[%s2706_s9 + $0x70] sm:$0xff] %vm1102_vm3, %v1091_v12 }
 0x3db   :  { %v1021_v14 = vpop.f32.mrb[74].mxu1 }
 0x3dc   :  { %v1092_v15 = vadd.f32 %v2570_v54, %v1021_v14  ;;  %v1683_v16 = vpop.f32.mrb[75].mxu1 }
 0x3de   :  { %1118 = vst.msk [vmem:[%s2706_s9 + $0x78] sm:$0xff] %vm1102_vm3, %v1092_v15 }
 0x3df   :  { %v1026_v17 = vpop.f32.mrb[76].mxu1 }
 0x3e0   :  { %v1093_v18 = vadd.f32 %v2570_v54, %v1026_v17  ;;  %v1686_v19 = vpop.f32.mrb[77].mxu1 }
 0x3e2   :  { %1119 = vst.msk [vmem:[%s2706_s9 + $0x80] sm:$0xff] %vm1102_vm3, %v1093_v18 }
 0x3e3   :  { %v1031_v20 = vpop.f32.mrb[78].mxu1 }
 0x3e4   :  { %v1094_v21 = vadd.f32 %v2570_v54, %v1031_v20  ;;  %v1689_v22 = vpop.f32.mrb[79].mxu1 }
 0x3e6   :  { %1120 = vst.msk [vmem:[%s2706_s9 + $0x88] sm:$0xff] %vm1102_vm3, %v1094_v21 }
 0x3e7   :  { %v1036_v23 = vpop.f32.mrb[80].mxu1 }
 0x3e8   :  { %v1095_v24 = vadd.f32 %v2570_v54, %v1036_v23  ;;  %v1692_v25 = vpop.f32.mrb[81].mxu1 }
 0x3ea   :  { %1121 = vst.msk [vmem:[%s2706_s9 + $0x90] sm:$0xff] %vm1102_vm3, %v1095_v24 }
 0x3eb   :  { %v1041_v26 = vpop.f32.mrb[82].mxu1 }
 0x3ec   :  { %v1096_v27 = vadd.f32 %v2570_v54, %v1041_v26  ;;  %v1695_v28 = vpop.f32.mrb[83].mxu1 }
 0x3ee   :  { %1122 = vst.msk [vmem:[%s2706_s9 + $0x98] sm:$0xff] %vm1102_vm3, %v1096_v27 }
 0x3ef   :  { %v1046_v29 = vpop.f32.mrb[84].mxu1 }
 0x3f0   :  { %v1097_v30 = vadd.f32 %v2570_v54, %v1046_v29  ;;  %v1698_v31 = vpop.f32.mrb[85].mxu1 }
 0x3f2   :  { %1123 = vst.msk [vmem:[%s2706_s9 + $0xa0] sm:$0xff] %vm1102_vm3, %v1097_v30 }
 0x3f3   :  { %v1051_v32 = vpop.f32.mrb[86].mxu1 }
 0x3f4   :  { %v1098_v33 = vadd.f32 %v2570_v54, %v1051_v32  ;;  %v1701_v34 = vpop.f32.mrb[87].mxu1 }
 0x3f6   :  { %1124 = vst.msk [vmem:[%s2706_s9 + $0xa8] sm:$0xff] %vm1102_vm3, %v1098_v33 }
 0x3f7   :  { %v1056_v35 = vpop.f32.mrb[88].mxu1 }
 0x3f8   :  { %v1099_v0 = vadd.f32 %v2570_v54, %v1056_v35  ;;  %v1704_v36 = vpop.f32.mrb[89].mxu1 }
 0x3fa   :  { %1125 = vst.msk [vmem:[%s2706_s9 + $0xb0] sm:$0xff] %vm1102_vm3, %v1099_v0 }
 0x3fb   :  { %v1061_v37 = vpop.f32.mrb[90].mxu1 }
 0x3fc   :  { %v1100_v38 = vadd.f32 %v2570_v54, %v1061_v37  ;;  %v1707_v39 = vpop.f32.mrb[91].mxu1 }
 0x3fe   :  { %1126 = vst.msk [vmem:[%s2706_s9 + $0xb8] sm:$0xff] %vm1102_vm3, %v1100_v38 }
 0x3ff   :  { %v1066_v40 = vpop.f32.mrb[92].mxu1 }
 0x400   :  { %v1101_v41 = vadd.f32 %v2570_v54, %v1066_v40  ;;  %v1710_v42 = vpop.f32.mrb[93].mxu1 }
 0x402   :  { %1127 = vst.msk [vmem:[%s2706_s9 + $0xc0] sm:$0xff] %vm1102_vm3, %v1101_v41 }
 0x403   :  { %1132 = vsyncpa [#allocation3], 1 }
 0x404   :  { %1133 = vsyncpa [#allocation5], 1 }

</bundles_post_ra>
